<compile_context>
chip_gen: v7x
topology: tpu7x:2x2x1
jax: 0.10.0
libtpu: 0.0.40
codegen_flags: <defaults>
</compile_context>

<pallas_src>
import jax
import jax.numpy as jnp
import numpy as np
from jax.experimental import pallas as pl
from jax.experimental.pallas import tpu as pltpu

EPS = 1e-5

# problem sizes (small, deterministic demo)
N_NODES, N_EDGES, N_GRAPHS = 16, 32, 2
NODE_DIM, EDGE_DIM, GLOBAL_DIM = 8, 6, 4
MLP_HIDDEN, MLP_LAYERS = 32, 4
EDGE_OUT = 10
NODE_OUT = 12
GLOBAL_OUT = NODE_OUT  # constructor passes node_output_size to the global MLP


def _pad16(x):
    return ((x + 15) // 16) * 16


# ---------------------------------------------------------------------------
# Packed-parameter layout (row offsets into the three stacked slabs).
#   w1_slab  : bf16 (160, H)  — edge | node | global first-layer weights, 16-row aligned
#   wd_slab  : bf16 (288, H)  — edge | node | global deep weights, 96 rows each
#   vec_slab : f32  (48, H)   — edge | node | global bias/gamma/beta rows, 16 rows each
# ---------------------------------------------------------------------------
E_W1_ROWS = 2 * NODE_DIM + EDGE_DIM + GLOBAL_DIM       # [src | dst | edge | u]
N_W1_ROWS = NODE_DIM + MLP_HIDDEN + GLOBAL_DIM         # [x | agg_e (padded to H) | u]
G_W1_ROWS = 2 * MLP_HIDDEN + GLOBAL_DIM                # [agg_n (pad H) | agg_e (pad H) | u]
E_W1_OFF = 0
N_W1_OFF = E_W1_OFF + _pad16(E_W1_ROWS)
G_W1_OFF = N_W1_OFF + _pad16(N_W1_ROWS)
W1_TOTAL_ROWS = G_W1_OFF + _pad16(G_W1_ROWS)

WD_ROWS = (MLP_LAYERS - 1) * MLP_HIDDEN
E_WD_OFF, N_WD_OFF, G_WD_OFF = 0, WD_ROWS, 2 * WD_ROWS

VEC_ROWS = 3 * (MLP_LAYERS - 1) + 1                    # b1,g1,be1, b2,g2,be2, b3,g3,be3, b4
VEC_PAD = _pad16(VEC_ROWS)
E_VEC_OFF, N_VEC_OFF, G_VEC_OFF = 0, VEC_PAD, 2 * VEC_PAD


# ---------------------------------------------------------------------------
# In-kernel MLP: Linear -> BatchNorm(batch stats) -> ReLU, plain last layer.
#   seg_pairs : list of (activation, first-layer weight block) pairs (sum of block matmuls
#               replaces the concatenation of inputs)
#   extra     : precomputed f32 first-layer contribution (the globals term, done via select)
#   wdeep_ref : bf16 slab with all deep weights; wd_off selects this MLP's 96-row block
#   vec_ref   : f32 slab with all bias/gamma/beta rows; vec_off selects this MLP's block
# Activations stay at width H; padded columns of the last layer are exactly zero.
# ---------------------------------------------------------------------------
def _run_mlp(seg_pairs, extra, wdeep_ref, vec_ref, wd_off, vec_off):
    bf16, f32 = jnp.bfloat16, jnp.float32
    h = extra
    for xin, w in seg_pairs:
        h = h + jnp.dot(xin.astype(bf16), w, preferred_element_type=f32)
    vrow = vec_off
    for layer in range(MLP_LAYERS):
        if layer > 0:
            w = wdeep_ref[wd_off + (layer - 1) * MLP_HIDDEN:
                          wd_off + layer * MLP_HIDDEN, :]
            h = jnp.dot(h.astype(bf16), w, preferred_element_type=f32)
        h = h + vec_ref[vrow:vrow + 1, :]
        vrow += 1
        if layer < MLP_LAYERS - 1:
            gamma = vec_ref[vrow:vrow + 1, :]
            beta = vec_ref[vrow + 1:vrow + 2, :]
            vrow += 2
            inv_m = 1.0 / h.shape[0]
            mean = jnp.sum(h, axis=0, keepdims=True) * inv_m
            cent = h - mean
            var = jnp.sum(cent * cent, axis=0, keepdims=True) * inv_m   # biased (training BN)
            scale = gamma * jax.lax.rsqrt(var + EPS)   # fold gamma into the norm scale
            h = cent * scale + beta
            h = jnp.maximum(h, 0.0)                    # ReLU
    return h


# ---------------------------------------------------------------------------
# Single fused kernel: edge update -> node update -> global update.
# Whole graph + packed params resident in VMEM (shapes are tiny), no grid.
# ---------------------------------------------------------------------------
def _fused_gn_kernel(nodes_ref, edges_ref, glob_ref,
                     idx_col_ref, idx_row_ref,
                     w1_ref, wdeep_ref, vec_ref,
                     out_edges_ref, out_nodes_ref, out_glob_ref):
    f32, bf16 = jnp.float32, jnp.bfloat16
    nodes = nodes_ref[...]            # (N, NODE_DIM)   f32
    edges = edges_ref[...]            # (E, EDGE_DIM)   f32
    glob = glob_ref[...]              # (G, GLOBAL_DIM) f32
    n, e, g = nodes.shape[0], edges.shape[0], glob.shape[0]

    # unpack the two small index refs (both orientations precomputed on host — no XLU)
    snd_col = idx_col_ref[:e, 0:1]    # (E,1) senders
    rcv_col = idx_col_ref[:e, 1:2]    # (E,1) receivers
    eg_col = idx_col_ref[:e, 2:3]     # (E,1) edge graph id
    ng_col = idx_col_ref[:n, 3:4]     # (N,1) node graph id
    rcv_row = idx_row_ref[0:1, :e]    # (1,E) receivers
    eg_row = idx_row_ref[1:2, :e]     # (1,E) edge graph id
    ng_row = idx_row_ref[2:3, :n]     # (1,N) node graph id

    def row_onehot(idx_col, width, dtype):
        # (M,1) int32 -> (M,width) with 1 at [m, idx_col[m]]
        lanes = jax.lax.broadcasted_iota(jnp.int32, (idx_col.shape[0], width), 1)
        return (lanes == idx_col).astype(dtype)

    def col_onehot(idx_row, height, dtype):
        # (1,M) int32 -> (height,M) with 1 at [idx_row[m], m]
        rows = jax.lax.broadcasted_iota(jnp.int32, (height, idx_row.shape[1]), 0)
        return (rows == idx_row).astype(dtype)

    def select_rows(table, idx_col):
        # table: (G,H) f32; idx_col: (M,1) int32 -> (M,H) f32.  VPU compare+select
        # (G is tiny) — replaces the (M,G) one-hot matmul broadcast of globals.
        out = jnp.zeros((idx_col.shape[0], table.shape[1]), f32)
        for gi in range(g):
            out = out + (idx_col == gi).astype(f32) * table[gi:gi + 1, :]
        return out

    nodes_bf = nodes.astype(bf16)
    glob_bf = glob.astype(bf16)

    # gather masks in bf16 (exact one-hot select, f32 accumulation)
    snd_oh = row_onehot(snd_col, n, bf16)    # (E,N)
    rcv_oh = row_onehot(rcv_col, n, bf16)    # (E,N)
    # scatter-add / segment-sum masks stay f32 (exact aggregation semantics)
    rcv_sc = col_onehot(rcv_row, n, f32)     # (N,E)
    ng_sc = col_onehot(ng_row, g, f32)       # (G,N)
    eg_sc = col_onehot(eg_row, g, f32)       # (G,E)

    # ---- edge update: e' = MLP_e([x[snd], x[rcv], e, u[eg]]) ----
    ew_src = w1_ref[E_W1_OFF:E_W1_OFF + NODE_DIM, :]
    ew_dst = w1_ref[E_W1_OFF + NODE_DIM:E_W1_OFF + 2 * NODE_DIM, :]
    ew_edge = w1_ref[E_W1_OFF + 2 * NODE_DIM:E_W1_OFF + 2 * NODE_DIM + EDGE_DIM, :]
    ew_u = w1_ref[E_W1_OFF + 2 * NODE_DIM + EDGE_DIM:E_W1_OFF + E_W1_ROWS, :]

    src = jnp.dot(snd_oh, nodes_bf, preferred_element_type=f32)     # (E, NODE_DIM)
    dst = jnp.dot(rcv_oh, nodes_bf, preferred_element_type=f32)     # (E, NODE_DIM)
    u_proj_e = jnp.dot(glob_bf, ew_u, preferred_element_type=f32)   # (G, H) once
    extra_e = select_rows(u_proj_e, eg_col)                         # (E, H) via VPU select

    new_edges = _run_mlp([(src, ew_src), (dst, ew_dst), (edges, ew_edge)],
                         extra_e, wdeep_ref, vec_ref, E_WD_OFF, E_VEC_OFF)
    # lane-dense store: full H-wide slab; columns >= EDGE_OUT are exactly zero
    out_edges_ref[...] = new_edges

    # ---- node update: n' = MLP_n([x, scatter_add(e', rcv), u[ng]]) ----
    nw_x = w1_ref[N_W1_OFF:N_W1_OFF + NODE_DIM, :]
    nw_agg = w1_ref[N_W1_OFF + NODE_DIM:N_W1_OFF + NODE_DIM + MLP_HIDDEN, :]
    nw_u = w1_ref[N_W1_OFF + NODE_DIM + MLP_HIDDEN:N_W1_OFF + N_W1_ROWS, :]

    agg_e = jnp.dot(rcv_sc, new_edges, preferred_element_type=f32)  # (N, H) f32 scatter-add
    u_proj_n = jnp.dot(glob_bf, nw_u, preferred_element_type=f32)   # (G, H)
    extra_n = select_rows(u_proj_n, ng_col)                         # (N, H)

    new_nodes = _run_mlp([(nodes, nw_x), (agg_e, nw_agg)],
                         extra_n, wdeep_ref, vec_ref, N_WD_OFF, N_VEC_OFF)
    out_nodes_ref[...] = new_nodes

    # ---- global update: u' = MLP_g([segsum(n'), segsum(e'), u]) ----
    gw_nagg = w1_ref[G_W1_OFF:G_W1_OFF + MLP_HIDDEN, :]
    gw_eagg = w1_ref[G_W1_OFF + MLP_HIDDEN:G_W1_OFF + 2 * MLP_HIDDEN, :]
    gw_u = w1_ref[G_W1_OFF + 2 * MLP_HIDDEN:G_W1_OFF + G_W1_ROWS, :]

    node_agg = jnp.dot(ng_sc, new_nodes, preferred_element_type=f32)   # (G, H)
    edge_agg = jnp.dot(eg_sc, new_edges, preferred_element_type=f32)   # (G, H)
    extra_g = jnp.dot(glob_bf, gw_u, preferred_element_type=f32)       # already per-graph rows

    new_glob = _run_mlp([(node_agg, gw_nagg), (edge_agg, gw_eagg)],
                        extra_g, wdeep_ref, vec_ref, G_WD_OFF, G_VEC_OFF)
    out_glob_ref[...] = new_glob


# ---------------------------------------------------------------------------
# Forward wrapper: one pallas_call, 8 VMEM input refs, lane-dense outputs
# narrowed outside the kernel.
# ---------------------------------------------------------------------------
@jax.jit
def mlp_graph_network_forward(nodes, edges, graph_globals, senders, receivers,
                              node_graph_idx, edge_graph_idx,
                              w1_slab, wdeep_slab, vec_slab):
    n, e, g = nodes.shape[0], edges.shape[0], graph_globals.shape[0]
    m = max(n, e)
    i32 = jnp.int32

    # pack the 7 index vectors into two tiny int32 refs (both orientations)
    idx_col = jnp.zeros((m, 4), i32)
    idx_col = idx_col.at[:e, 0].set(senders.astype(i32))
    idx_col = idx_col.at[:e, 1].set(receivers.astype(i32))
    idx_col = idx_col.at[:e, 2].set(edge_graph_idx.astype(i32))
    idx_col = idx_col.at[:n, 3].set(node_graph_idx.astype(i32))
    idx_row = jnp.zeros((3, m), i32)
    idx_row = idx_row.at[0, :e].set(receivers.astype(i32))
    idx_row = idx_row.at[1, :e].set(edge_graph_idx.astype(i32))
    idx_row = idx_row.at[2, :n].set(node_graph_idx.astype(i32))

    out_shape = (
        jax.ShapeDtypeStruct((e, MLP_HIDDEN), jnp.float32),   # lane-dense slabs
        jax.ShapeDtypeStruct((n, MLP_HIDDEN), jnp.float32),
        jax.ShapeDtypeStruct((g, MLP_HIDDEN), jnp.float32),
    )
    vmem = pl.BlockSpec(memory_space=pltpu.MemorySpace.VMEM)
    out_e, out_n, out_g = pl.pallas_call(
        _fused_gn_kernel,
        out_shape=out_shape,
        in_specs=[vmem] * 8,
        out_specs=(vmem, vmem, vmem),
        # explicit VMEM budget; also covers v5e's 16 MiB default scoped limit and leaves
        # headroom on v7x's 64 MiB physical VMEM
        compiler_params=pltpu.CompilerParams(vmem_limit_bytes=32 * 1024 * 1024),
    )(nodes, edges, graph_globals, idx_col, idx_row, w1_slab, wdeep_slab, vec_slab)

    # narrow the lane-dense kernel outputs with a plain XLA slice (free, outside the kernel)
    return out_e[:, :EDGE_OUT], out_n[:, :NODE_OUT], out_g[:, :GLOBAL_OUT]


# ---------------------------------------------------------------------------
# Parameter init (logical PyG-MLP layer shapes) + packing into the 3-slab kernel layout.
# ---------------------------------------------------------------------------
def init_mlp_params(key, in_dim, hidden, out_dim, num_layers):
    dims = [in_dim] + [hidden] * (num_layers - 1) + [out_dim]
    flat = []
    for i in range(num_layers):
        key, kw, kb = jax.random.split(key, 3)
        w = jax.random.normal(kw, (dims[i], dims[i + 1]), jnp.float32) / jnp.sqrt(dims[i])
        b = 0.1 * jax.random.normal(kb, (1, dims[i + 1]), jnp.float32)
        flat += [w, b]
        if i < num_layers - 1:
            flat += [jnp.ones((1, dims[i + 1]), jnp.float32),   # gamma
                     jnp.zeros((1, dims[i + 1]), jnp.float32)]  # beta
    return flat


def _pack_one_mlp(logical, seg_dims_logical, seg_dims_kernel):
    """Split/pad the first-layer weight into per-segment row blocks (zero-padded to the
    kernel activation widths, then 16-row aligned), stack deep weights, and pack all
    bias/gamma/beta rows into one f32 block (padded to 16 rows)."""
    hidden, num_layers = MLP_HIDDEN, MLP_LAYERS
    W1 = logical[0]
    blocks, off = [], 0
    for d_log, d_ker in zip(seg_dims_logical, seg_dims_kernel):
        blk = W1[off:off + d_log, :]
        off += d_log
        if d_ker > d_log:   # zero-pad rows: matching activation columns are exactly zero
            blk = jnp.pad(blk, ((0, d_ker - d_log), (0, 0)))
        blocks.append(blk)
    w1 = jnp.concatenate(blocks, axis=0)
    w1 = jnp.pad(w1, ((0, _pad16(w1.shape[0]) - w1.shape[0]), (0, 0))).astype(jnp.bfloat16)

    deep, vec_rows, idx = [], [], 1
    for layer in range(num_layers):
        if layer > 0:
            w = logical[idx]; idx += 1
            if w.shape[1] < hidden:
                w = jnp.pad(w, ((0, 0), (0, hidden - w.shape[1])))   # pad last-layer cols
            deep.append(w)
        b = logical[idx]; idx += 1
        if b.shape[1] < hidden:
            b = jnp.pad(b, ((0, 0), (0, hidden - b.shape[1])))
        vec_rows.append(b)
        if layer < num_layers - 1:
            vec_rows.append(logical[idx])       # gamma
            vec_rows.append(logical[idx + 1])   # beta
            idx += 2
    w_deep = jnp.concatenate(deep, axis=0).astype(jnp.bfloat16)       # ((L-1)*H, H)
    vecs = jnp.concatenate(vec_rows, axis=0).astype(jnp.float32)      # (10, H)
    vecs = jnp.pad(vecs, ((0, VEC_PAD - vecs.shape[0]), (0, 0)))
    return w1, w_deep, vecs


def pack_all_params(logical):
    e_w1, e_wd, e_vec = _pack_one_mlp(
        logical["edge"],
        (NODE_DIM, NODE_DIM, EDGE_DIM, GLOBAL_DIM),
        (NODE_DIM, NODE_DIM, EDGE_DIM, GLOBAL_DIM))
    n_w1, n_wd, n_vec = _pack_one_mlp(
        logical["node"],
        (NODE_DIM, EDGE_OUT, GLOBAL_DIM),
        (NODE_DIM, MLP_HIDDEN, GLOBAL_DIM))         # agg(e') arrives at width H
    g_w1, g_wd, g_vec = _pack_one_mlp(
        logical["global"],
        (NODE_OUT, EDGE_OUT, GLOBAL_DIM),
        (MLP_HIDDEN, MLP_HIDDEN, GLOBAL_DIM))       # both aggs arrive at width H
    w1_slab = jnp.concatenate([e_w1, n_w1, g_w1], axis=0)
    assert w1_slab.shape[0] == W1_TOTAL_ROWS
    wd_slab = jnp.concatenate([e_wd, n_wd, g_wd], axis=0)
    vec_slab = jnp.concatenate([e_vec, n_vec, g_vec], axis=0)
    return w1_slab, wd_slab, vec_slab


# ---------------------------------------------------------------------------
# Pure-JAX reference (for correctness check).  Matmul operands are cast to bf16
# to match the kernel's MXU precision policy (accumulation stays f32).
# ---------------------------------------------------------------------------
def _mlp_ref(x, params, num_layers):
    idx = 0
    for layer in range(num_layers):
        w, b = params[idx], params[idx + 1]
        idx += 2
        x = jnp.dot(x.astype(jnp.bfloat16), w.astype(jnp.bfloat16),
                    preferred_element_type=jnp.float32) + b
        if layer < num_layers - 1:
            gamma, beta = params[idx], params[idx + 1]
            idx += 2
            mu = x.mean(0, keepdims=True)
            var = ((x - mu) ** 2).mean(0, keepdims=True)   # biased, like BatchNorm1d training
            x = (x - mu) / jnp.sqrt(var + EPS) * gamma + beta
            x = jnp.maximum(x, 0.0)
    return x


def _forward_ref(nodes, edges, graph_globals, senders, receivers,
                 node_graph_idx, edge_graph_idx, params):
    src = jnp.take(nodes, senders, axis=0)
    dst = jnp.take(nodes, receivers, axis=0)
    u_e = jnp.take(graph_globals, edge_graph_idx, axis=0)
    new_edges = _mlp_ref(jnp.concatenate([src, dst, edges, u_e], -1), params["edge"], MLP_LAYERS)

    agg = jax.ops.segment_sum(new_edges, receivers, num_segments=nodes.shape[0])
    u_n = jnp.take(graph_globals, node_graph_idx, axis=0)
    new_nodes = _mlp_ref(jnp.concatenate([nodes, agg, u_n], -1), params["node"], MLP_LAYERS)

    node_agg = jax.ops.segment_sum(new_nodes, node_graph_idx, num_segments=graph_globals.shape[0])
    edge_agg = jax.ops.segment_sum(new_edges, edge_graph_idx, num_segments=graph_globals.shape[0])
    new_globals = _mlp_ref(jnp.concatenate([node_agg, edge_agg, graph_globals], -1),
                           params["global"], MLP_LAYERS)
    return new_edges, new_nodes, new_globals


if __name__ == "__main__":
    key = jax.random.PRNGKey(0)
    (k_nodes, k_edges, k_glob, k_snd0, k_rcv0, k_snd1, k_rcv1,
     k_pe, k_pn, k_pg) = jax.random.split(key, 10)

    nodes = jax.random.normal(k_nodes, (N_NODES, NODE_DIM), jnp.float32)
    edges = jax.random.normal(k_edges, (N_EDGES, EDGE_DIM), jnp.float32)
    graph_globals = jax.random.normal(k_glob, (N_GRAPHS, GLOBAL_DIM), jnp.float32)

    # two graphs: nodes 0..7 / 8..15, edges 0..15 / 16..31 (edges stay inside their graph)
    node_graph_idx = jnp.concatenate([jnp.zeros(8, jnp.int32), jnp.ones(8, jnp.int32)])
    edge_graph_idx = jnp.concatenate([jnp.zeros(16, jnp.int32), jnp.ones(16, jnp.int32)])
    senders = jnp.concatenate([jax.random.randint(k_snd0, (16,), 0, 8),
                               jax.random.randint(k_snd1, (16,), 8, 16)]).astype(jnp.int32)
    receivers = jnp.concatenate([jax.random.randint(k_rcv0, (16,), 0, 8),
                                 jax.random.randint(k_rcv1, (16,), 8, 16)]).astype(jnp.int32)

    edge_in = 2 * NODE_DIM + EDGE_DIM + GLOBAL_DIM          # [src, dst, e, u]
    node_in = NODE_DIM + EDGE_OUT + GLOBAL_DIM              # [x, agg(e'), u]
    global_in = NODE_OUT + EDGE_OUT + GLOBAL_DIM            # [agg(n'), agg(e'), u]
    logical = {
        "edge": init_mlp_params(k_pe, edge_in, MLP_HIDDEN, EDGE_OUT, MLP_LAYERS),
        "node": init_mlp_params(k_pn, node_in, MLP_HIDDEN, NODE_OUT, MLP_LAYERS),
        "global": init_mlp_params(k_pg, global_in, MLP_HIDDEN, GLOBAL_OUT, MLP_LAYERS),
    }
    w1_slab, wdeep_slab, vec_slab = pack_all_params(logical)

    out_e, out_n, out_g = mlp_graph_network_forward(
        nodes, edges, graph_globals, senders, receivers,
        node_graph_idx, edge_graph_idx, w1_slab, wdeep_slab, vec_slab)
    jax.block_until_ready((out_e, out_n, out_g))

    ref_e, ref_n, ref_g = _forward_ref(
        nodes, edges, graph_globals, senders, receivers,
        node_graph_idx, edge_graph_idx, logical)

    np.testing.assert_allclose(np.asarray(out_e), np.asarray(ref_e), rtol=5e-2, atol=5e-2)
    np.testing.assert_allclose(np.asarray(out_n), np.asarray(ref_n), rtol=5e-2, atol=5e-2)
    np.testing.assert_allclose(np.asarray(out_g), np.asarray(ref_g), rtol=5e-2, atol=5e-2)

    print("KERNEL_OK")
</pallas_src>

<mosaic_0001>
module attributes {stable_mosaic.version = 11 : i64} {
  func.func @_fused_gn_kernel(%arg0: memref<16x8xf32, #tpu.memory_space<vmem>>, %arg1: memref<32x6xf32, #tpu.memory_space<vmem>>, %arg2: memref<2x4xf32, #tpu.memory_space<vmem>>, %arg3: memref<32x4xi32, #tpu.memory_space<vmem>>, %arg4: memref<3x32xi32, #tpu.memory_space<vmem>>, %arg5: memref<160x32xbf16, #tpu.memory_space<vmem>>, %arg6: memref<288x32xbf16, #tpu.memory_space<vmem>>, %arg7: memref<48x32xf32, #tpu.memory_space<vmem>>, %arg8: memref<32x32xf32, #tpu.memory_space<vmem>>, %arg9: memref<16x32xf32, #tpu.memory_space<vmem>>, %arg10: memref<2x32xf32, #tpu.memory_space<vmem>>) attributes {dimension_semantics = [], scalar_prefetch = 0 : i64, scratch_operands = 0 : i64, tpu.core_type = #tpu.core_type<tc>} {
    %c0 = arith.constant 0 : index
    %c0_0 = arith.constant 0 : index
    %0 = vector.load %arg0[%c0, %c0_0] : memref<16x8xf32, #tpu.memory_space<vmem>>, vector<16x8xf32>
    %c0_1 = arith.constant 0 : index
    %c0_2 = arith.constant 0 : index
    %1 = vector.load %arg1[%c0_1, %c0_2] : memref<32x6xf32, #tpu.memory_space<vmem>>, vector<32x6xf32>
    %c0_3 = arith.constant 0 : index
    %c0_4 = arith.constant 0 : index
    %2 = vector.load %arg2[%c0_3, %c0_4] : memref<2x4xf32, #tpu.memory_space<vmem>>, vector<2x4xf32>
    %c0_5 = arith.constant 0 : index
    %c0_6 = arith.constant 0 : index
    %3 = vector.load %arg3[%c0_5, %c0_6] : memref<32x4xi32, #tpu.memory_space<vmem>>, vector<32x1xi32>
    %c0_7 = arith.constant 0 : index
    %c1 = arith.constant 1 : index
    %4 = vector.load %arg3[%c0_7, %c1] : memref<32x4xi32, #tpu.memory_space<vmem>>, vector<32x1xi32>
    %c0_8 = arith.constant 0 : index
    %c2 = arith.constant 2 : index
    %5 = vector.load %arg3[%c0_8, %c2] : memref<32x4xi32, #tpu.memory_space<vmem>>, vector<32x1xi32>
    %c0_9 = arith.constant 0 : index
    %c3 = arith.constant 3 : index
    %6 = vector.load %arg3[%c0_9, %c3] : memref<32x4xi32, #tpu.memory_space<vmem>>, vector<16x1xi32>
    %c0_10 = arith.constant 0 : index
    %c0_11 = arith.constant 0 : index
    %7 = vector.load %arg4[%c0_10, %c0_11] : memref<3x32xi32, #tpu.memory_space<vmem>>, vector<1x32xi32>
    %c1_12 = arith.constant 1 : index
    %c0_13 = arith.constant 0 : index
    %8 = vector.load %arg4[%c1_12, %c0_13] : memref<3x32xi32, #tpu.memory_space<vmem>>, vector<1x32xi32>
    %c2_14 = arith.constant 2 : index
    %c0_15 = arith.constant 0 : index
    %9 = vector.load %arg4[%c2_14, %c0_15] : memref<3x32xi32, #tpu.memory_space<vmem>>, vector<1x16xi32>
    %10 = arith.truncf %0 : vector<16x8xf32> to vector<16x8xbf16>
    %11 = arith.truncf %2 : vector<2x4xf32> to vector<2x4xbf16>
    %12 = tpu.iota {dimensions = array<i32: 1>} : vector<32x16xi32>
    %13 = vector.broadcast %3 : vector<32x1xi32> to vector<32x16xi32>
    %14 = arith.cmpi eq, %12, %13 : vector<32x16xi32>
    %15 = arith.extui %14 : vector<32x16xi1> to vector<32x16xi32>
    %16 = arith.sitofp %15 : vector<32x16xi32> to vector<32x16xf32>
    %17 = arith.truncf %16 : vector<32x16xf32> to vector<32x16xbf16>
    %18 = tpu.iota {dimensions = array<i32: 1>} : vector<32x16xi32>
    %19 = vector.broadcast %4 : vector<32x1xi32> to vector<32x16xi32>
    %20 = arith.cmpi eq, %18, %19 : vector<32x16xi32>
    %21 = arith.extui %20 : vector<32x16xi1> to vector<32x16xi32>
    %22 = arith.sitofp %21 : vector<32x16xi32> to vector<32x16xf32>
    %23 = arith.truncf %22 : vector<32x16xf32> to vector<32x16xbf16>
    %24 = tpu.iota {dimensions = array<i32: 0>} : vector<16x32xi32>
    %25 = vector.broadcast %7 : vector<1x32xi32> to vector<16x32xi32>
    %26 = arith.cmpi eq, %24, %25 : vector<16x32xi32>
    %27 = arith.extui %26 : vector<16x32xi1> to vector<16x32xi32>
    %28 = arith.sitofp %27 : vector<16x32xi32> to vector<16x32xf32>
    %29 = tpu.iota {dimensions = array<i32: 0>} : vector<2x16xi32>
    %30 = vector.broadcast %9 : vector<1x16xi32> to vector<2x16xi32>
    %31 = arith.cmpi eq, %29, %30 : vector<2x16xi32>
    %32 = arith.extui %31 : vector<2x16xi1> to vector<2x16xi32>
    %33 = arith.sitofp %32 : vector<2x16xi32> to vector<2x16xf32>
    %34 = tpu.iota {dimensions = array<i32: 0>} : vector<2x32xi32>
    %35 = vector.broadcast %8 : vector<1x32xi32> to vector<2x32xi32>
    %36 = arith.cmpi eq, %34, %35 : vector<2x32xi32>
    %37 = arith.extui %36 : vector<2x32xi1> to vector<2x32xi32>
    %38 = arith.sitofp %37 : vector<2x32xi32> to vector<2x32xf32>
    %c0_16 = arith.constant 0 : index
    %c0_17 = arith.constant 0 : index
    %39 = vector.load %arg5[%c0_16, %c0_17] : memref<160x32xbf16, #tpu.memory_space<vmem>>, vector<8x32xbf16>
    %c8 = arith.constant 8 : index
    %c0_18 = arith.constant 0 : index
    %40 = vector.load %arg5[%c8, %c0_18] : memref<160x32xbf16, #tpu.memory_space<vmem>>, vector<8x32xbf16>
    %c16 = arith.constant 16 : index
    %c0_19 = arith.constant 0 : index
    %41 = vector.load %arg5[%c16, %c0_19] : memref<160x32xbf16, #tpu.memory_space<vmem>>, vector<6x32xbf16>
    %c22 = arith.constant 22 : index
    %c0_20 = arith.constant 0 : index
    %42 = vector.load %arg5[%c22, %c0_20] : memref<160x32xbf16, #tpu.memory_space<vmem>>, vector<4x32xbf16>
    %cst = arith.constant dense<0.000000e+00> : vector<32x8xf32>
    %43 = tpu.matmul %17, %10, %cst {dimension_numbers = #tpu.dot_dimension_numbers<[1], [0], [0], [1], [0, 0, 1, 1], [], []>} : vector<32x16xbf16>, vector<16x8xbf16>, vector<32x8xf32> -> vector<32x8xf32>
    %cst_21 = arith.constant dense<0.000000e+00> : vector<32x8xf32>
    %44 = tpu.matmul %23, %10, %cst_21 {dimension_numbers = #tpu.dot_dimension_numbers<[1], [0], [0], [1], [0, 0, 1, 1], [], []>} : vector<32x16xbf16>, vector<16x8xbf16>, vector<32x8xf32> -> vector<32x8xf32>
    %cst_22 = arith.constant dense<0.000000e+00> : vector<2x32xf32>
    %45 = tpu.matmul %11, %42, %cst_22 {dimension_numbers = #tpu.dot_dimension_numbers<[1], [0], [0], [1], [0, 0, 1, 1], [], []>} : vector<2x4xbf16>, vector<4x32xbf16>, vector<2x32xf32> -> vector<2x32xf32>
    %cst_23 = arith.constant 0.000000e+00 : f32
    %46 = vector.broadcast %cst_23 : f32 to vector<32x32xf32>
    %c0_i32 = arith.constant 0 : i32
    %47 = vector.broadcast %c0_i32 : i32 to vector<32x1xi32>
    %48 = arith.cmpi eq, %5, %47 : vector<32x1xi32>
    %49 = arith.extui %48 : vector<32x1xi1> to vector<32x1xi32>
    %50 = arith.sitofp %49 : vector<32x1xi32> to vector<32x1xf32>
    %51 = vector.extract_strided_slice %45 {offsets = [0, 0], sizes = [1, 32], strides = [1, 1]} : vector<2x32xf32> to vector<1x32xf32>
    %52 = vector.broadcast %50 : vector<32x1xf32> to vector<32x32xf32>
    %53 = vector.broadcast %51 : vector<1x32xf32> to vector<32x32xf32>
    %54 = arith.mulf %52, %53 : vector<32x32xf32>
    %55 = arith.addf %46, %54 : vector<32x32xf32>
    %c1_i32 = arith.constant 1 : i32
    %56 = vector.broadcast %c1_i32 : i32 to vector<32x1xi32>
    %57 = arith.cmpi eq, %5, %56 : vector<32x1xi32>
    %58 = arith.extui %57 : vector<32x1xi1> to vector<32x1xi32>
    %59 = arith.sitofp %58 : vector<32x1xi32> to vector<32x1xf32>
    %60 = vector.extract_strided_slice %45 {offsets = [1, 0], sizes = [1, 32], strides = [1, 1]} : vector<2x32xf32> to vector<1x32xf32>
    %61 = vector.broadcast %59 : vector<32x1xf32> to vector<32x32xf32>
    %62 = vector.broadcast %60 : vector<1x32xf32> to vector<32x32xf32>
    %63 = arith.mulf %61, %62 : vector<32x32xf32>
    %64 = arith.addf %55, %63 : vector<32x32xf32>
    %65 = arith.truncf %43 : vector<32x8xf32> to vector<32x8xbf16>
    %cst_24 = arith.constant dense<0.000000e+00> : vector<32x32xf32>
    %66 = tpu.matmul %65, %39, %cst_24 {dimension_numbers = #tpu.dot_dimension_numbers<[1], [0], [0], [1], [0, 0, 1, 1], [], []>} : vector<32x8xbf16>, vector<8x32xbf16>, vector<32x32xf32> -> vector<32x32xf32>
    %67 = arith.addf %64, %66 : vector<32x32xf32>
    %68 = arith.truncf %44 : vector<32x8xf32> to vector<32x8xbf16>
    %cst_25 = arith.constant dense<0.000000e+00> : vector<32x32xf32>
    %69 = tpu.matmul %68, %40, %cst_25 {dimension_numbers = #tpu.dot_dimension_numbers<[1], [0], [0], [1], [0, 0, 1, 1], [], []>} : vector<32x8xbf16>, vector<8x32xbf16>, vector<32x32xf32> -> vector<32x32xf32>
    %70 = arith.addf %67, %69 : vector<32x32xf32>
    %71 = arith.truncf %1 : vector<32x6xf32> to vector<32x6xbf16>
    %cst_26 = arith.constant dense<0.000000e+00> : vector<32x32xf32>
    %72 = tpu.matmul %71, %41, %cst_26 {dimension_numbers = #tpu.dot_dimension_numbers<[1], [0], [0], [1], [0, 0, 1, 1], [], []>} : vector<32x6xbf16>, vector<6x32xbf16>, vector<32x32xf32> -> vector<32x32xf32>
    %73 = arith.addf %70, %72 : vector<32x32xf32>
    %c0_27 = arith.constant 0 : index
    %c0_28 = arith.constant 0 : index
    %74 = vector.load %arg7[%c0_27, %c0_28] : memref<48x32xf32, #tpu.memory_space<vmem>>, vector<1x32xf32>
    %75 = vector.broadcast %74 : vector<1x32xf32> to vector<32x32xf32>
    %76 = arith.addf %73, %75 : vector<32x32xf32>
    %c1_29 = arith.constant 1 : index
    %c0_30 = arith.constant 0 : index
    %77 = vector.load %arg7[%c1_29, %c0_30] : memref<48x32xf32, #tpu.memory_space<vmem>>, vector<1x32xf32>
    %c2_31 = arith.constant 2 : index
    %c0_32 = arith.constant 0 : index
    %78 = vector.load %arg7[%c2_31, %c0_32] : memref<48x32xf32, #tpu.memory_space<vmem>>, vector<1x32xf32>
    %cst_33 = arith.constant dense<0.000000e+00> : vector<32xf32>
    %79 = vector.multi_reduction <add>, %76, %cst_33 [0] : vector<32x32xf32> to vector<32xf32>
    %80 = vector.shape_cast %79 : vector<32xf32> to vector<1x32xf32>
    %cst_34 = arith.constant 3.125000e-02 : f32
    %81 = vector.broadcast %cst_34 : f32 to vector<1x32xf32>
    %82 = arith.mulf %80, %81 : vector<1x32xf32>
    %83 = vector.broadcast %82 : vector<1x32xf32> to vector<32x32xf32>
    %84 = arith.subf %76, %83 : vector<32x32xf32>
    %85 = arith.mulf %84, %84 : vector<32x32xf32>
    %cst_35 = arith.constant dense<0.000000e+00> : vector<32xf32>
    %86 = vector.multi_reduction <add>, %85, %cst_35 [0] : vector<32x32xf32> to vector<32xf32>
    %87 = vector.shape_cast %86 : vector<32xf32> to vector<1x32xf32>
    %cst_36 = arith.constant 3.125000e-02 : f32
    %88 = vector.broadcast %cst_36 : f32 to vector<1x32xf32>
    %89 = arith.mulf %87, %88 : vector<1x32xf32>
    %cst_37 = arith.constant 9.99999974E-6 : f32
    %90 = vector.broadcast %cst_37 : f32 to vector<1x32xf32>
    %91 = arith.addf %89, %90 : vector<1x32xf32>
    %92 = math.rsqrt %91 : vector<1x32xf32>
    %93 = arith.mulf %77, %92 : vector<1x32xf32>
    %94 = vector.broadcast %93 : vector<1x32xf32> to vector<32x32xf32>
    %95 = arith.mulf %84, %94 : vector<32x32xf32>
    %96 = vector.broadcast %78 : vector<1x32xf32> to vector<32x32xf32>
    %97 = arith.addf %95, %96 : vector<32x32xf32>
    %cst_38 = arith.constant 0.000000e+00 : f32
    %98 = vector.broadcast %cst_38 : f32 to vector<32x32xf32>
    %99 = arith.maximumf %97, %98 : vector<32x32xf32>
    %c0_39 = arith.constant 0 : index
    %c0_40 = arith.constant 0 : index
    %100 = vector.load %arg6[%c0_39, %c0_40] : memref<288x32xbf16, #tpu.memory_space<vmem>>, vector<32x32xbf16>
    %101 = arith.truncf %99 : vector<32x32xf32> to vector<32x32xbf16>
    %cst_41 = arith.constant dense<0.000000e+00> : vector<32x32xf32>
    %102 = tpu.matmul %101, %100, %cst_41 {dimension_numbers = #tpu.dot_dimension_numbers<[1], [0], [0], [1], [0, 0, 1, 1], [], []>} : vector<32x32xbf16>, vector<32x32xbf16>, vector<32x32xf32> -> vector<32x32xf32>
    %c3_42 = arith.constant 3 : index
    %c0_43 = arith.constant 0 : index
    %103 = vector.load %arg7[%c3_42, %c0_43] : memref<48x32xf32, #tpu.memory_space<vmem>>, vector<1x32xf32>
    %104 = vector.broadcast %103 : vector<1x32xf32> to vector<32x32xf32>
    %105 = arith.addf %102, %104 : vector<32x32xf32>
    %c4 = arith.constant 4 : index
    %c0_44 = arith.constant 0 : index
    %106 = vector.load %arg7[%c4, %c0_44] : memref<48x32xf32, #tpu.memory_space<vmem>>, vector<1x32xf32>
    %c5 = arith.constant 5 : index
    %c0_45 = arith.constant 0 : index
    %107 = vector.load %arg7[%c5, %c0_45] : memref<48x32xf32, #tpu.memory_space<vmem>>, vector<1x32xf32>
    %cst_46 = arith.constant dense<0.000000e+00> : vector<32xf32>
    %108 = vector.multi_reduction <add>, %105, %cst_46 [0] : vector<32x32xf32> to vector<32xf32>
    %109 = vector.shape_cast %108 : vector<32xf32> to vector<1x32xf32>
    %cst_47 = arith.constant 3.125000e-02 : f32
    %110 = vector.broadcast %cst_47 : f32 to vector<1x32xf32>
    %111 = arith.mulf %109, %110 : vector<1x32xf32>
    %112 = vector.broadcast %111 : vector<1x32xf32> to vector<32x32xf32>
    %113 = arith.subf %105, %112 : vector<32x32xf32>
    %114 = arith.mulf %113, %113 : vector<32x32xf32>
    %cst_48 = arith.constant dense<0.000000e+00> : vector<32xf32>
    %115 = vector.multi_reduction <add>, %114, %cst_48 [0] : vector<32x32xf32> to vector<32xf32>
    %116 = vector.shape_cast %115 : vector<32xf32> to vector<1x32xf32>
    %cst_49 = arith.constant 3.125000e-02 : f32
    %117 = vector.broadcast %cst_49 : f32 to vector<1x32xf32>
    %118 = arith.mulf %116, %117 : vector<1x32xf32>
    %cst_50 = arith.constant 9.99999974E-6 : f32
    %119 = vector.broadcast %cst_50 : f32 to vector<1x32xf32>
    %120 = arith.addf %118, %119 : vector<1x32xf32>
    %121 = math.rsqrt %120 : vector<1x32xf32>
    %122 = arith.mulf %106, %121 : vector<1x32xf32>
    %123 = vector.broadcast %122 : vector<1x32xf32> to vector<32x32xf32>
    %124 = arith.mulf %113, %123 : vector<32x32xf32>
    %125 = vector.broadcast %107 : vector<1x32xf32> to vector<32x32xf32>
    %126 = arith.addf %124, %125 : vector<32x32xf32>
    %cst_51 = arith.constant 0.000000e+00 : f32
    %127 = vector.broadcast %cst_51 : f32 to vector<32x32xf32>
    %128 = arith.maximumf %126, %127 : vector<32x32xf32>
    %c32 = arith.constant 32 : index
    %c0_52 = arith.constant 0 : index
    %129 = vector.load %arg6[%c32, %c0_52] : memref<288x32xbf16, #tpu.memory_space<vmem>>, vector<32x32xbf16>
    %130 = arith.truncf %128 : vector<32x32xf32> to vector<32x32xbf16>
    %cst_53 = arith.constant dense<0.000000e+00> : vector<32x32xf32>
    %131 = tpu.matmul %130, %129, %cst_53 {dimension_numbers = #tpu.dot_dimension_numbers<[1], [0], [0], [1], [0, 0, 1, 1], [], []>} : vector<32x32xbf16>, vector<32x32xbf16>, vector<32x32xf32> -> vector<32x32xf32>
    %c6 = arith.constant 6 : index
    %c0_54 = arith.constant 0 : index
    %132 = vector.load %arg7[%c6, %c0_54] : memref<48x32xf32, #tpu.memory_space<vmem>>, vector<1x32xf32>
    %133 = vector.broadcast %132 : vector<1x32xf32> to vector<32x32xf32>
    %134 = arith.addf %131, %133 : vector<32x32xf32>
    %c7 = arith.constant 7 : index
    %c0_55 = arith.constant 0 : index
    %135 = vector.load %arg7[%c7, %c0_55] : memref<48x32xf32, #tpu.memory_space<vmem>>, vector<1x32xf32>
    %c8_56 = arith.constant 8 : index
    %c0_57 = arith.constant 0 : index
    %136 = vector.load %arg7[%c8_56, %c0_57] : memref<48x32xf32, #tpu.memory_space<vmem>>, vector<1x32xf32>
    %cst_58 = arith.constant dense<0.000000e+00> : vector<32xf32>
    %137 = vector.multi_reduction <add>, %134, %cst_58 [0] : vector<32x32xf32> to vector<32xf32>
    %138 = vector.shape_cast %137 : vector<32xf32> to vector<1x32xf32>
    %cst_59 = arith.constant 3.125000e-02 : f32
    %139 = vector.broadcast %cst_59 : f32 to vector<1x32xf32>
    %140 = arith.mulf %138, %139 : vector<1x32xf32>
    %141 = vector.broadcast %140 : vector<1x32xf32> to vector<32x32xf32>
    %142 = arith.subf %134, %141 : vector<32x32xf32>
    %143 = arith.mulf %142, %142 : vector<32x32xf32>
    %cst_60 = arith.constant dense<0.000000e+00> : vector<32xf32>
    %144 = vector.multi_reduction <add>, %143, %cst_60 [0] : vector<32x32xf32> to vector<32xf32>
    %145 = vector.shape_cast %144 : vector<32xf32> to vector<1x32xf32>
    %cst_61 = arith.constant 3.125000e-02 : f32
    %146 = vector.broadcast %cst_61 : f32 to vector<1x32xf32>
    %147 = arith.mulf %145, %146 : vector<1x32xf32>
    %cst_62 = arith.constant 9.99999974E-6 : f32
    %148 = vector.broadcast %cst_62 : f32 to vector<1x32xf32>
    %149 = arith.addf %147, %148 : vector<1x32xf32>
    %150 = math.rsqrt %149 : vector<1x32xf32>
    %151 = arith.mulf %135, %150 : vector<1x32xf32>
    %152 = vector.broadcast %151 : vector<1x32xf32> to vector<32x32xf32>
    %153 = arith.mulf %142, %152 : vector<32x32xf32>
    %154 = vector.broadcast %136 : vector<1x32xf32> to vector<32x32xf32>
    %155 = arith.addf %153, %154 : vector<32x32xf32>
    %cst_63 = arith.constant 0.000000e+00 : f32
    %156 = vector.broadcast %cst_63 : f32 to vector<32x32xf32>
    %157 = arith.maximumf %155, %156 : vector<32x32xf32>
    %c64 = arith.constant 64 : index
    %c0_64 = arith.constant 0 : index
    %158 = vector.load %arg6[%c64, %c0_64] : memref<288x32xbf16, #tpu.memory_space<vmem>>, vector<32x32xbf16>
    %159 = arith.truncf %157 : vector<32x32xf32> to vector<32x32xbf16>
    %cst_65 = arith.constant dense<0.000000e+00> : vector<32x32xf32>
    %160 = tpu.matmul %159, %158, %cst_65 {dimension_numbers = #tpu.dot_dimension_numbers<[1], [0], [0], [1], [0, 0, 1, 1], [], []>} : vector<32x32xbf16>, vector<32x32xbf16>, vector<32x32xf32> -> vector<32x32xf32>
    %c9 = arith.constant 9 : index
    %c0_66 = arith.constant 0 : index
    %161 = vector.load %arg7[%c9, %c0_66] : memref<48x32xf32, #tpu.memory_space<vmem>>, vector<1x32xf32>
    %162 = vector.broadcast %161 : vector<1x32xf32> to vector<32x32xf32>
    %163 = arith.addf %160, %162 : vector<32x32xf32>
    %c0_67 = arith.constant 0 : index
    %c0_68 = arith.constant 0 : index
    %164 = vector.load %arg8[%c0_67, %c0_68] : memref<32x32xf32, #tpu.memory_space<vmem>>, vector<32x32xf32>
    tpu.vector_store %arg8[%c0_67, %c0_68], %163 {strides = array<i32>} : memref<32x32xf32, #tpu.memory_space<vmem>>, vector<32x32xf32>,
    %c32_69 = arith.constant 32 : index
    %c0_70 = arith.constant 0 : index
    %165 = vector.load %arg5[%c32_69, %c0_70] : memref<160x32xbf16, #tpu.memory_space<vmem>>, vector<8x32xbf16>
    %c40 = arith.constant 40 : index
    %c0_71 = arith.constant 0 : index
    %166 = vector.load %arg5[%c40, %c0_71] : memref<160x32xbf16, #tpu.memory_space<vmem>>, vector<32x32xbf16>
    %c72 = arith.constant 72 : index
    %c0_72 = arith.constant 0 : index
    %167 = vector.load %arg5[%c72, %c0_72] : memref<160x32xbf16, #tpu.memory_space<vmem>>, vector<4x32xbf16>
    %cst_73 = arith.constant dense<0.000000e+00> : vector<16x32xf32>
    %168 = tpu.matmul %28, %163, %cst_73 {dimension_numbers = #tpu.dot_dimension_numbers<[1], [0], [0], [1], [0, 0, 1, 1], [], []>} : vector<16x32xf32>, vector<32x32xf32>, vector<16x32xf32> -> vector<16x32xf32>
    %cst_74 = arith.constant dense<0.000000e+00> : vector<2x32xf32>
    %169 = tpu.matmul %11, %167, %cst_74 {dimension_numbers = #tpu.dot_dimension_numbers<[1], [0], [0], [1], [0, 0, 1, 1], [], []>} : vector<2x4xbf16>, vector<4x32xbf16>, vector<2x32xf32> -> vector<2x32xf32>
    %cst_75 = arith.constant 0.000000e+00 : f32
    %170 = vector.broadcast %cst_75 : f32 to vector<16x32xf32>
    %c0_i32_76 = arith.constant 0 : i32
    %171 = vector.broadcast %c0_i32_76 : i32 to vector<16x1xi32>
    %172 = arith.cmpi eq, %6, %171 : vector<16x1xi32>
    %173 = arith.extui %172 : vector<16x1xi1> to vector<16x1xi32>
    %174 = arith.sitofp %173 : vector<16x1xi32> to vector<16x1xf32>
    %175 = vector.extract_strided_slice %169 {offsets = [0, 0], sizes = [1, 32], strides = [1, 1]} : vector<2x32xf32> to vector<1x32xf32>
    %176 = vector.broadcast %174 : vector<16x1xf32> to vector<16x32xf32>
    %177 = vector.broadcast %175 : vector<1x32xf32> to vector<16x32xf32>
    %178 = arith.mulf %176, %177 : vector<16x32xf32>
    %179 = arith.addf %170, %178 : vector<16x32xf32>
    %c1_i32_77 = arith.constant 1 : i32
    %180 = vector.broadcast %c1_i32_77 : i32 to vector<16x1xi32>
    %181 = arith.cmpi eq, %6, %180 : vector<16x1xi32>
    %182 = arith.extui %181 : vector<16x1xi1> to vector<16x1xi32>
    %183 = arith.sitofp %182 : vector<16x1xi32> to vector<16x1xf32>
    %184 = vector.extract_strided_slice %169 {offsets = [1, 0], sizes = [1, 32], strides = [1, 1]} : vector<2x32xf32> to vector<1x32xf32>
    %185 = vector.broadcast %183 : vector<16x1xf32> to vector<16x32xf32>
    %186 = vector.broadcast %184 : vector<1x32xf32> to vector<16x32xf32>
    %187 = arith.mulf %185, %186 : vector<16x32xf32>
    %188 = arith.addf %179, %187 : vector<16x32xf32>
    %189 = arith.truncf %0 : vector<16x8xf32> to vector<16x8xbf16>
    %cst_78 = arith.constant dense<0.000000e+00> : vector<16x32xf32>
    %190 = tpu.matmul %189, %165, %cst_78 {dimension_numbers = #tpu.dot_dimension_numbers<[1], [0], [0], [1], [0, 0, 1, 1], [], []>} : vector<16x8xbf16>, vector<8x32xbf16>, vector<16x32xf32> -> vector<16x32xf32>
    %191 = arith.addf %188, %190 : vector<16x32xf32>
    %192 = arith.truncf %168 : vector<16x32xf32> to vector<16x32xbf16>
    %cst_79 = arith.constant dense<0.000000e+00> : vector<16x32xf32>
    %193 = tpu.matmul %192, %166, %cst_79 {dimension_numbers = #tpu.dot_dimension_numbers<[1], [0], [0], [1], [0, 0, 1, 1], [], []>} : vector<16x32xbf16>, vector<32x32xbf16>, vector<16x32xf32> -> vector<16x32xf32>
    %194 = arith.addf %191, %193 : vector<16x32xf32>
    %c16_80 = arith.constant 16 : index
    %c0_81 = arith.constant 0 : index
    %195 = vector.load %arg7[%c16_80, %c0_81] : memref<48x32xf32, #tpu.memory_space<vmem>>, vector<1x32xf32>
    %196 = vector.broadcast %195 : vector<1x32xf32> to vector<16x32xf32>
    %197 = arith.addf %194, %196 : vector<16x32xf32>
    %c17 = arith.constant 17 : index
    %c0_82 = arith.constant 0 : index
    %198 = vector.load %arg7[%c17, %c0_82] : memref<48x32xf32, #tpu.memory_space<vmem>>, vector<1x32xf32>
    %c18 = arith.constant 18 : index
    %c0_83 = arith.constant 0 : index
    %199 = vector.load %arg7[%c18, %c0_83] : memref<48x32xf32, #tpu.memory_space<vmem>>, vector<1x32xf32>
    %cst_84 = arith.constant dense<0.000000e+00> : vector<32xf32>
    %200 = vector.multi_reduction <add>, %197, %cst_84 [0] : vector<16x32xf32> to vector<32xf32>
    %201 = vector.shape_cast %200 : vector<32xf32> to vector<1x32xf32>
    %cst_85 = arith.constant 6.250000e-02 : f32
    %202 = vector.broadcast %cst_85 : f32 to vector<1x32xf32>
    %203 = arith.mulf %201, %202 : vector<1x32xf32>
    %204 = vector.broadcast %203 : vector<1x32xf32> to vector<16x32xf32>
    %205 = arith.subf %197, %204 : vector<16x32xf32>
    %206 = arith.mulf %205, %205 : vector<16x32xf32>
    %cst_86 = arith.constant dense<0.000000e+00> : vector<32xf32>
    %207 = vector.multi_reduction <add>, %206, %cst_86 [0] : vector<16x32xf32> to vector<32xf32>
    %208 = vector.shape_cast %207 : vector<32xf32> to vector<1x32xf32>
    %cst_87 = arith.constant 6.250000e-02 : f32
    %209 = vector.broadcast %cst_87 : f32 to vector<1x32xf32>
    %210 = arith.mulf %208, %209 : vector<1x32xf32>
    %cst_88 = arith.constant 9.99999974E-6 : f32
    %211 = vector.broadcast %cst_88 : f32 to vector<1x32xf32>
    %212 = arith.addf %210, %211 : vector<1x32xf32>
    %213 = math.rsqrt %212 : vector<1x32xf32>
    %214 = arith.mulf %198, %213 : vector<1x32xf32>
    %215 = vector.broadcast %214 : vector<1x32xf32> to vector<16x32xf32>
    %216 = arith.mulf %205, %215 : vector<16x32xf32>
    %217 = vector.broadcast %199 : vector<1x32xf32> to vector<16x32xf32>
    %218 = arith.addf %216, %217 : vector<16x32xf32>
    %cst_89 = arith.constant 0.000000e+00 : f32
    %219 = vector.broadcast %cst_89 : f32 to vector<16x32xf32>
    %220 = arith.maximumf %218, %219 : vector<16x32xf32>
    %c96 = arith.constant 96 : index
    %c0_90 = arith.constant 0 : index
    %221 = vector.load %arg6[%c96, %c0_90] : memref<288x32xbf16, #tpu.memory_space<vmem>>, vector<32x32xbf16>
    %222 = arith.truncf %220 : vector<16x32xf32> to vector<16x32xbf16>
    %cst_91 = arith.constant dense<0.000000e+00> : vector<16x32xf32>
    %223 = tpu.matmul %222, %221, %cst_91 {dimension_numbers = #tpu.dot_dimension_numbers<[1], [0], [0], [1], [0, 0, 1, 1], [], []>} : vector<16x32xbf16>, vector<32x32xbf16>, vector<16x32xf32> -> vector<16x32xf32>
    %c19 = arith.constant 19 : index
    %c0_92 = arith.constant 0 : index
    %224 = vector.load %arg7[%c19, %c0_92] : memref<48x32xf32, #tpu.memory_space<vmem>>, vector<1x32xf32>
    %225 = vector.broadcast %224 : vector<1x32xf32> to vector<16x32xf32>
    %226 = arith.addf %223, %225 : vector<16x32xf32>
    %c20 = arith.constant 20 : index
    %c0_93 = arith.constant 0 : index
    %227 = vector.load %arg7[%c20, %c0_93] : memref<48x32xf32, #tpu.memory_space<vmem>>, vector<1x32xf32>
    %c21 = arith.constant 21 : index
    %c0_94 = arith.constant 0 : index
    %228 = vector.load %arg7[%c21, %c0_94] : memref<48x32xf32, #tpu.memory_space<vmem>>, vector<1x32xf32>
    %cst_95 = arith.constant dense<0.000000e+00> : vector<32xf32>
    %229 = vector.multi_reduction <add>, %226, %cst_95 [0] : vector<16x32xf32> to vector<32xf32>
    %230 = vector.shape_cast %229 : vector<32xf32> to vector<1x32xf32>
    %cst_96 = arith.constant 6.250000e-02 : f32
    %231 = vector.broadcast %cst_96 : f32 to vector<1x32xf32>
    %232 = arith.mulf %230, %231 : vector<1x32xf32>
    %233 = vector.broadcast %232 : vector<1x32xf32> to vector<16x32xf32>
    %234 = arith.subf %226, %233 : vector<16x32xf32>
    %235 = arith.mulf %234, %234 : vector<16x32xf32>
    %cst_97 = arith.constant dense<0.000000e+00> : vector<32xf32>
    %236 = vector.multi_reduction <add>, %235, %cst_97 [0] : vector<16x32xf32> to vector<32xf32>
    %237 = vector.shape_cast %236 : vector<32xf32> to vector<1x32xf32>
    %cst_98 = arith.constant 6.250000e-02 : f32
    %238 = vector.broadcast %cst_98 : f32 to vector<1x32xf32>
    %239 = arith.mulf %237, %238 : vector<1x32xf32>
    %cst_99 = arith.constant 9.99999974E-6 : f32
    %240 = vector.broadcast %cst_99 : f32 to vector<1x32xf32>
    %241 = arith.addf %239, %240 : vector<1x32xf32>
    %242 = math.rsqrt %241 : vector<1x32xf32>
    %243 = arith.mulf %227, %242 : vector<1x32xf32>
    %244 = vector.broadcast %243 : vector<1x32xf32> to vector<16x32xf32>
    %245 = arith.mulf %234, %244 : vector<16x32xf32>
    %246 = vector.broadcast %228 : vector<1x32xf32> to vector<16x32xf32>
    %247 = arith.addf %245, %246 : vector<16x32xf32>
    %cst_100 = arith.constant 0.000000e+00 : f32
    %248 = vector.broadcast %cst_100 : f32 to vector<16x32xf32>
    %249 = arith.maximumf %247, %248 : vector<16x32xf32>
    %c128 = arith.constant 128 : index
    %c0_101 = arith.constant 0 : index
    %250 = vector.load %arg6[%c128, %c0_101] : memref<288x32xbf16, #tpu.memory_space<vmem>>, vector<32x32xbf16>
    %251 = arith.truncf %249 : vector<16x32xf32> to vector<16x32xbf16>
    %cst_102 = arith.constant dense<0.000000e+00> : vector<16x32xf32>
    %252 = tpu.matmul %251, %250, %cst_102 {dimension_numbers = #tpu.dot_dimension_numbers<[1], [0], [0], [1], [0, 0, 1, 1], [], []>} : vector<16x32xbf16>, vector<32x32xbf16>, vector<16x32xf32> -> vector<16x32xf32>
    %c22_103 = arith.constant 22 : index
    %c0_104 = arith.constant 0 : index
    %253 = vector.load %arg7[%c22_103, %c0_104] : memref<48x32xf32, #tpu.memory_space<vmem>>, vector<1x32xf32>
    %254 = vector.broadcast %253 : vector<1x32xf32> to vector<16x32xf32>
    %255 = arith.addf %252, %254 : vector<16x32xf32>
    %c23 = arith.constant 23 : index
    %c0_105 = arith.constant 0 : index
    %256 = vector.load %arg7[%c23, %c0_105] : memref<48x32xf32, #tpu.memory_space<vmem>>, vector<1x32xf32>
    %c24 = arith.constant 24 : index
    %c0_106 = arith.constant 0 : index
    %257 = vector.load %arg7[%c24, %c0_106] : memref<48x32xf32, #tpu.memory_space<vmem>>, vector<1x32xf32>
    %cst_107 = arith.constant dense<0.000000e+00> : vector<32xf32>
    %258 = vector.multi_reduction <add>, %255, %cst_107 [0] : vector<16x32xf32> to vector<32xf32>
    %259 = vector.shape_cast %258 : vector<32xf32> to vector<1x32xf32>
    %cst_108 = arith.constant 6.250000e-02 : f32
    %260 = vector.broadcast %cst_108 : f32 to vector<1x32xf32>
    %261 = arith.mulf %259, %260 : vector<1x32xf32>
    %262 = vector.broadcast %261 : vector<1x32xf32> to vector<16x32xf32>
    %263 = arith.subf %255, %262 : vector<16x32xf32>
    %264 = arith.mulf %263, %263 : vector<16x32xf32>
    %cst_109 = arith.constant dense<0.000000e+00> : vector<32xf32>
    %265 = vector.multi_reduction <add>, %264, %cst_109 [0] : vector<16x32xf32> to vector<32xf32>
    %266 = vector.shape_cast %265 : vector<32xf32> to vector<1x32xf32>
    %cst_110 = arith.constant 6.250000e-02 : f32
    %267 = vector.broadcast %cst_110 : f32 to vector<1x32xf32>
    %268 = arith.mulf %266, %267 : vector<1x32xf32>
    %cst_111 = arith.constant 9.99999974E-6 : f32
    %269 = vector.broadcast %cst_111 : f32 to vector<1x32xf32>
    %270 = arith.addf %268, %269 : vector<1x32xf32>
    %271 = math.rsqrt %270 : vector<1x32xf32>
    %272 = arith.mulf %256, %271 : vector<1x32xf32>
    %273 = vector.broadcast %272 : vector<1x32xf32> to vector<16x32xf32>
    %274 = arith.mulf %263, %273 : vector<16x32xf32>
    %275 = vector.broadcast %257 : vector<1x32xf32> to vector<16x32xf32>
    %276 = arith.addf %274, %275 : vector<16x32xf32>
    %cst_112 = arith.constant 0.000000e+00 : f32
    %277 = vector.broadcast %cst_112 : f32 to vector<16x32xf32>
    %278 = arith.maximumf %276, %277 : vector<16x32xf32>
    %c160 = arith.constant 160 : index
    %c0_113 = arith.constant 0 : index
    %279 = vector.load %arg6[%c160, %c0_113] : memref<288x32xbf16, #tpu.memory_space<vmem>>, vector<32x32xbf16>
    %280 = arith.truncf %278 : vector<16x32xf32> to vector<16x32xbf16>
    %cst_114 = arith.constant dense<0.000000e+00> : vector<16x32xf32>
    %281 = tpu.matmul %280, %279, %cst_114 {dimension_numbers = #tpu.dot_dimension_numbers<[1], [0], [0], [1], [0, 0, 1, 1], [], []>} : vector<16x32xbf16>, vector<32x32xbf16>, vector<16x32xf32> -> vector<16x32xf32>
    %c25 = arith.constant 25 : index
    %c0_115 = arith.constant 0 : index
    %282 = vector.load %arg7[%c25, %c0_115] : memref<48x32xf32, #tpu.memory_space<vmem>>, vector<1x32xf32>
    %283 = vector.broadcast %282 : vector<1x32xf32> to vector<16x32xf32>
    %284 = arith.addf %281, %283 : vector<16x32xf32>
    %c0_116 = arith.constant 0 : index
    %c0_117 = arith.constant 0 : index
    %285 = vector.load %arg9[%c0_116, %c0_117] : memref<16x32xf32, #tpu.memory_space<vmem>>, vector<16x32xf32>
    tpu.vector_store %arg9[%c0_116, %c0_117], %284 {strides = array<i32>} : memref<16x32xf32, #tpu.memory_space<vmem>>, vector<16x32xf32>,
    %c80 = arith.constant 80 : index
    %c0_118 = arith.constant 0 : index
    %286 = vector.load %arg5[%c80, %c0_118] : memref<160x32xbf16, #tpu.memory_space<vmem>>, vector<32x32xbf16>
    %c112 = arith.constant 112 : index
    %c0_119 = arith.constant 0 : index
    %287 = vector.load %arg5[%c112, %c0_119] : memref<160x32xbf16, #tpu.memory_space<vmem>>, vector<32x32xbf16>
    %c144 = arith.constant 144 : index
    %c0_120 = arith.constant 0 : index
    %288 = vector.load %arg5[%c144, %c0_120] : memref<160x32xbf16, #tpu.memory_space<vmem>>, vector<4x32xbf16>
    %cst_121 = arith.constant dense<0.000000e+00> : vector<2x32xf32>
    %289 = tpu.matmul %33, %284, %cst_121 {dimension_numbers = #tpu.dot_dimension_numbers<[1], [0], [0], [1], [0, 0, 1, 1], [], []>} : vector<2x16xf32>, vector<16x32xf32>, vector<2x32xf32> -> vector<2x32xf32>
    %cst_122 = arith.constant dense<0.000000e+00> : vector<2x32xf32>
    %290 = tpu.matmul %38, %163, %cst_122 {dimension_numbers = #tpu.dot_dimension_numbers<[1], [0], [0], [1], [0, 0, 1, 1], [], []>} : vector<2x32xf32>, vector<32x32xf32>, vector<2x32xf32> -> vector<2x32xf32>
    %cst_123 = arith.constant dense<0.000000e+00> : vector<2x32xf32>
    %291 = tpu.matmul %11, %288, %cst_123 {dimension_numbers = #tpu.dot_dimension_numbers<[1], [0], [0], [1], [0, 0, 1, 1], [], []>} : vector<2x4xbf16>, vector<4x32xbf16>, vector<2x32xf32> -> vector<2x32xf32>
    %292 = arith.truncf %289 : vector<2x32xf32> to vector<2x32xbf16>
    %cst_124 = arith.constant dense<0.000000e+00> : vector<2x32xf32>
    %293 = tpu.matmul %292, %286, %cst_124 {dimension_numbers = #tpu.dot_dimension_numbers<[1], [0], [0], [1], [0, 0, 1, 1], [], []>} : vector<2x32xbf16>, vector<32x32xbf16>, vector<2x32xf32> -> vector<2x32xf32>
    %294 = arith.addf %291, %293 : vector<2x32xf32>
    %295 = arith.truncf %290 : vector<2x32xf32> to vector<2x32xbf16>
    %cst_125 = arith.constant dense<0.000000e+00> : vector<2x32xf32>
    %296 = tpu.matmul %295, %287, %cst_125 {dimension_numbers = #tpu.dot_dimension_numbers<[1], [0], [0], [1], [0, 0, 1, 1], [], []>} : vector<2x32xbf16>, vector<32x32xbf16>, vector<2x32xf32> -> vector<2x32xf32>
    %297 = arith.addf %294, %296 : vector<2x32xf32>
    %c32_126 = arith.constant 32 : index
    %c0_127 = arith.constant 0 : index
    %298 = vector.load %arg7[%c32_126, %c0_127] : memref<48x32xf32, #tpu.memory_space<vmem>>, vector<1x32xf32>
    %299 = vector.broadcast %298 : vector<1x32xf32> to vector<2x32xf32>
    %300 = arith.addf %297, %299 : vector<2x32xf32>
    %c33 = arith.constant 33 : index
    %c0_128 = arith.constant 0 : index
    %301 = vector.load %arg7[%c33, %c0_128] : memref<48x32xf32, #tpu.memory_space<vmem>>, vector<1x32xf32>
    %c34 = arith.constant 34 : index
    %c0_129 = arith.constant 0 : index
    %302 = vector.load %arg7[%c34, %c0_129] : memref<48x32xf32, #tpu.memory_space<vmem>>, vector<1x32xf32>
    %cst_130 = arith.constant dense<0.000000e+00> : vector<32xf32>
    %303 = vector.multi_reduction <add>, %300, %cst_130 [0] : vector<2x32xf32> to vector<32xf32>
    %304 = vector.shape_cast %303 : vector<32xf32> to vector<1x32xf32>
    %cst_131 = arith.constant 5.000000e-01 : f32
    %305 = vector.broadcast %cst_131 : f32 to vector<1x32xf32>
    %306 = arith.mulf %304, %305 : vector<1x32xf32>
    %307 = vector.broadcast %306 : vector<1x32xf32> to vector<2x32xf32>
    %308 = arith.subf %300, %307 : vector<2x32xf32>
    %309 = arith.mulf %308, %308 : vector<2x32xf32>
    %cst_132 = arith.constant dense<0.000000e+00> : vector<32xf32>
    %310 = vector.multi_reduction <add>, %309, %cst_132 [0] : vector<2x32xf32> to vector<32xf32>
    %311 = vector.shape_cast %310 : vector<32xf32> to vector<1x32xf32>
    %cst_133 = arith.constant 5.000000e-01 : f32
    %312 = vector.broadcast %cst_133 : f32 to vector<1x32xf32>
    %313 = arith.mulf %311, %312 : vector<1x32xf32>
    %cst_134 = arith.constant 9.99999974E-6 : f32
    %314 = vector.broadcast %cst_134 : f32 to vector<1x32xf32>
    %315 = arith.addf %313, %314 : vector<1x32xf32>
    %316 = math.rsqrt %315 : vector<1x32xf32>
    %317 = arith.mulf %301, %316 : vector<1x32xf32>
    %318 = vector.broadcast %317 : vector<1x32xf32> to vector<2x32xf32>
    %319 = arith.mulf %308, %318 : vector<2x32xf32>
    %320 = vector.broadcast %302 : vector<1x32xf32> to vector<2x32xf32>
    %321 = arith.addf %319, %320 : vector<2x32xf32>
    %cst_135 = arith.constant 0.000000e+00 : f32
    %322 = vector.broadcast %cst_135 : f32 to vector<2x32xf32>
    %323 = arith.maximumf %321, %322 : vector<2x32xf32>
    %c192 = arith.constant 192 : index
    %c0_136 = arith.constant 0 : index
    %324 = vector.load %arg6[%c192, %c0_136] : memref<288x32xbf16, #tpu.memory_space<vmem>>, vector<32x32xbf16>
    %325 = arith.truncf %323 : vector<2x32xf32> to vector<2x32xbf16>
    %cst_137 = arith.constant dense<0.000000e+00> : vector<2x32xf32>
    %326 = tpu.matmul %325, %324, %cst_137 {dimension_numbers = #tpu.dot_dimension_numbers<[1], [0], [0], [1], [0, 0, 1, 1], [], []>} : vector<2x32xbf16>, vector<32x32xbf16>, vector<2x32xf32> -> vector<2x32xf32>
    %c35 = arith.constant 35 : index
    %c0_138 = arith.constant 0 : index
    %327 = vector.load %arg7[%c35, %c0_138] : memref<48x32xf32, #tpu.memory_space<vmem>>, vector<1x32xf32>
    %328 = vector.broadcast %327 : vector<1x32xf32> to vector<2x32xf32>
    %329 = arith.addf %326, %328 : vector<2x32xf32>
    %c36 = arith.constant 36 : index
    %c0_139 = arith.constant 0 : index
    %330 = vector.load %arg7[%c36, %c0_139] : memref<48x32xf32, #tpu.memory_space<vmem>>, vector<1x32xf32>
    %c37 = arith.constant 37 : index
    %c0_140 = arith.constant 0 : index
    %331 = vector.load %arg7[%c37, %c0_140] : memref<48x32xf32, #tpu.memory_space<vmem>>, vector<1x32xf32>
    %cst_141 = arith.constant dense<0.000000e+00> : vector<32xf32>
    %332 = vector.multi_reduction <add>, %329, %cst_141 [0] : vector<2x32xf32> to vector<32xf32>
    %333 = vector.shape_cast %332 : vector<32xf32> to vector<1x32xf32>
    %cst_142 = arith.constant 5.000000e-01 : f32
    %334 = vector.broadcast %cst_142 : f32 to vector<1x32xf32>
    %335 = arith.mulf %333, %334 : vector<1x32xf32>
    %336 = vector.broadcast %335 : vector<1x32xf32> to vector<2x32xf32>
    %337 = arith.subf %329, %336 : vector<2x32xf32>
    %338 = arith.mulf %337, %337 : vector<2x32xf32>
    %cst_143 = arith.constant dense<0.000000e+00> : vector<32xf32>
    %339 = vector.multi_reduction <add>, %338, %cst_143 [0] : vector<2x32xf32> to vector<32xf32>
    %340 = vector.shape_cast %339 : vector<32xf32> to vector<1x32xf32>
    %cst_144 = arith.constant 5.000000e-01 : f32
    %341 = vector.broadcast %cst_144 : f32 to vector<1x32xf32>
    %342 = arith.mulf %340, %341 : vector<1x32xf32>
    %cst_145 = arith.constant 9.99999974E-6 : f32
    %343 = vector.broadcast %cst_145 : f32 to vector<1x32xf32>
    %344 = arith.addf %342, %343 : vector<1x32xf32>
    %345 = math.rsqrt %344 : vector<1x32xf32>
    %346 = arith.mulf %330, %345 : vector<1x32xf32>
    %347 = vector.broadcast %346 : vector<1x32xf32> to vector<2x32xf32>
    %348 = arith.mulf %337, %347 : vector<2x32xf32>
    %349 = vector.broadcast %331 : vector<1x32xf32> to vector<2x32xf32>
    %350 = arith.addf %348, %349 : vector<2x32xf32>
    %cst_146 = arith.constant 0.000000e+00 : f32
    %351 = vector.broadcast %cst_146 : f32 to vector<2x32xf32>
    %352 = arith.maximumf %350, %351 : vector<2x32xf32>
    %c224 = arith.constant 224 : index
    %c0_147 = arith.constant 0 : index
    %353 = vector.load %arg6[%c224, %c0_147] : memref<288x32xbf16, #tpu.memory_space<vmem>>, vector<32x32xbf16>
    %354 = arith.truncf %352 : vector<2x32xf32> to vector<2x32xbf16>
    %cst_148 = arith.constant dense<0.000000e+00> : vector<2x32xf32>
    %355 = tpu.matmul %354, %353, %cst_148 {dimension_numbers = #tpu.dot_dimension_numbers<[1], [0], [0], [1], [0, 0, 1, 1], [], []>} : vector<2x32xbf16>, vector<32x32xbf16>, vector<2x32xf32> -> vector<2x32xf32>
    %c38 = arith.constant 38 : index
    %c0_149 = arith.constant 0 : index
    %356 = vector.load %arg7[%c38, %c0_149] : memref<48x32xf32, #tpu.memory_space<vmem>>, vector<1x32xf32>
    %357 = vector.broadcast %356 : vector<1x32xf32> to vector<2x32xf32>
    %358 = arith.addf %355, %357 : vector<2x32xf32>
    %c39 = arith.constant 39 : index
    %c0_150 = arith.constant 0 : index
    %359 = vector.load %arg7[%c39, %c0_150] : memref<48x32xf32, #tpu.memory_space<vmem>>, vector<1x32xf32>
    %c40_151 = arith.constant 40 : index
    %c0_152 = arith.constant 0 : index
    %360 = vector.load %arg7[%c40_151, %c0_152] : memref<48x32xf32, #tpu.memory_space<vmem>>, vector<1x32xf32>
    %cst_153 = arith.constant dense<0.000000e+00> : vector<32xf32>
    %361 = vector.multi_reduction <add>, %358, %cst_153 [0] : vector<2x32xf32> to vector<32xf32>
    %362 = vector.shape_cast %361 : vector<32xf32> to vector<1x32xf32>
    %cst_154 = arith.constant 5.000000e-01 : f32
    %363 = vector.broadcast %cst_154 : f32 to vector<1x32xf32>
    %364 = arith.mulf %362, %363 : vector<1x32xf32>
    %365 = vector.broadcast %364 : vector<1x32xf32> to vector<2x32xf32>
    %366 = arith.subf %358, %365 : vector<2x32xf32>
    %367 = arith.mulf %366, %366 : vector<2x32xf32>
    %cst_155 = arith.constant dense<0.000000e+00> : vector<32xf32>
    %368 = vector.multi_reduction <add>, %367, %cst_155 [0] : vector<2x32xf32> to vector<32xf32>
    %369 = vector.shape_cast %368 : vector<32xf32> to vector<1x32xf32>
    %cst_156 = arith.constant 5.000000e-01 : f32
    %370 = vector.broadcast %cst_156 : f32 to vector<1x32xf32>
    %371 = arith.mulf %369, %370 : vector<1x32xf32>
    %cst_157 = arith.constant 9.99999974E-6 : f32
    %372 = vector.broadcast %cst_157 : f32 to vector<1x32xf32>
    %373 = arith.addf %371, %372 : vector<1x32xf32>
    %374 = math.rsqrt %373 : vector<1x32xf32>
    %375 = arith.mulf %359, %374 : vector<1x32xf32>
    %376 = vector.broadcast %375 : vector<1x32xf32> to vector<2x32xf32>
    %377 = arith.mulf %366, %376 : vector<2x32xf32>
    %378 = vector.broadcast %360 : vector<1x32xf32> to vector<2x32xf32>
    %379 = arith.addf %377, %378 : vector<2x32xf32>
    %cst_158 = arith.constant 0.000000e+00 : f32
    %380 = vector.broadcast %cst_158 : f32 to vector<2x32xf32>
    %381 = arith.maximumf %379, %380 : vector<2x32xf32>
    %c256 = arith.constant 256 : index
    %c0_159 = arith.constant 0 : index
    %382 = vector.load %arg6[%c256, %c0_159] : memref<288x32xbf16, #tpu.memory_space<vmem>>, vector<32x32xbf16>
    %383 = arith.truncf %381 : vector<2x32xf32> to vector<2x32xbf16>
    %cst_160 = arith.constant dense<0.000000e+00> : vector<2x32xf32>
    %384 = tpu.matmul %383, %382, %cst_160 {dimension_numbers = #tpu.dot_dimension_numbers<[1], [0], [0], [1], [0, 0, 1, 1], [], []>} : vector<2x32xbf16>, vector<32x32xbf16>, vector<2x32xf32> -> vector<2x32xf32>
    %c41 = arith.constant 41 : index
    %c0_161 = arith.constant 0 : index
    %385 = vector.load %arg7[%c41, %c0_161] : memref<48x32xf32, #tpu.memory_space<vmem>>, vector<1x32xf32>
    %386 = vector.broadcast %385 : vector<1x32xf32> to vector<2x32xf32>
    %387 = arith.addf %384, %386 : vector<2x32xf32>
    %c0_162 = arith.constant 0 : index
    %c0_163 = arith.constant 0 : index
    %388 = vector.load %arg10[%c0_162, %c0_163] : memref<2x32xf32, #tpu.memory_space<vmem>>, vector<2x32xf32>
    tpu.vector_store %arg10[%c0_162, %c0_163], %387 {strides = array<i32>} : memref<2x32xf32, #tpu.memory_space<vmem>>, vector<2x32xf32>,
    return
  }
}

</mosaic_0001>

<bundles_post_ra>
// kernel: mlp_graph_network_forward.1
= control target key start
LH: loop header
LB: loop body
LE: loop exit
PB: predicated region body
PF: predicated region fallthrough
CT: control target
= control target key end

     0   :  { %16 = vsyncpa [#allocation3], 0  ;;  %v2802_v2 = vmov 0   ;;  %v2803_v8 = vmov 0.0   ;;  %v2804_v9 = vmov 1   ;;  %s3370_s0 = inlined_call_operand.vmem [shape: f32[16,8], index: 0, kind: input, shape index: {}]   ;;  %s3371_s1 = inlined_call_operand.vmem [shape: f32[32,6], index: 1, kind: input, shape index: {}]   ;;  %s3372_s2 = inlined_call_operand.vmem [shape: f32[2,4], index: 2, kind: input, shape index: {}]   ;;  %s3373_s3 = inlined_call_operand.vmem [shape: s32[32,4], index: 3, kind: input, shape index: {}]   ;;  %s3374_s4 = inlined_call_operand.vmem [shape: s32[3,32], index: 4, kind: input, shape index: {}]   ;;  %s3375_s5 = inlined_call_operand.vmem [shape: bf16[160,32], index: 5, kind: input, shape index: {}]   ;;  %s3376_s6 = inlined_call_operand.vmem [shape: bf16[288,32], index: 6, kind: input, shape index: {}]   ;;  %s3377_s7 = inlined_call_operand.vmem [shape: f32[48,32], index: 7, kind: input, shape index: {}]   ;;  %s3378_s8 = inlined_call_operand.vmem [shape: f32[32,32], index: 8, kind: output, shape index: {0}]   ;;  %s3379_s9 = inlined_call_operand.hbm [shape: f32[16,32], index: 9, kind: output, shape index: {1}]   ;;  %s3380_s10 = inlined_call_operand.hbm [shape: f32[2,32], index: 10, kind: output, shape index: {2}]  }
   0x1   :  { %v2871_v0 = vld [vmem:[%s3373_s3 + $0x10] sm:$0xff]  ;;  %v2876_v1 = vld [vmem:[%s3373_s3] sm:$0xff]  ;;  %2674 = vset.pattern.permute.xlu1 %v2802_v2  ;;  %2673 = vset.pattern.permute.xlu0 %v2802_v2  ;;  %v2881_v3 = vld [vmem:[%s3373_s3 + $0x18] sm:$0xff] }
   0x2   :  { %60 = vperm.xlu1 %2674, %v2871_v0   ;;  %54 = vperm.xlu0 %2673, %v2876_v1   ;;  %v2888_v4 = vld [vmem:[%s3373_s3 + $0x8] sm:$0xff]  ;;  %v35_v5 = vld [vmem:[%s3370_s0] sm:$0xff] }
   0x3   :  { %v36_v6 = vld [vmem:[%s3370_s0 + $0x8] sm:$0xff] }
   0x4   :  { %v2896_v7 = vpack.c.bf16 %v36_v6, %v35_v5 }
   0x6   :  { %63 = vperm.xlu1 %2674, %v2881_v3   ;;  %57 = vperm.xlu0 %2673, %v2888_v4  }
   0x7   :  { %2451 = vmatprep.subr.bf16.mxu0 %v2896_v7  ;;  %2457 = vmatprep.subr.bf16.mxu1 %v2896_v7 }
   0x8   :  { %2452 = vmatpush3.bf16.msra.mxu0 %v2896_v7  ;;  %2458 = vmatpush3.bf16.msra.mxu1 %v2896_v7 }
   0x9   :  { %2463 = vmatprep.subr.bf16.mxu0 %v2803_v8 }
   0xa   :  { %2676 = vset.pattern.permute.xlu1 %v2804_v9  ;;  %2675 = vset.pattern.permute.xlu0 %v2804_v9 }
   0xb   :  { %83 = vperm.xlu1 %2676, %v2888_v4   ;;  %80 = vperm.xlu0 %2675, %v2876_v1  }
   0xf   :  { %86 = vperm.xlu1 %2676, %v2871_v0   ;;  %89 = vperm.xlu0 %2675, %v2881_v3  }
  0x10   :  { %17 = vsyncpa [#allocation5], 0  ;;  %v51_v10 = vlaneseq  ;;  %vm137_vm4 = vcmask 130048   ;;  %v132_v32 = vld [vmem:[%s3375_s5] sm:$0xf]  ;;  %vm399_vm9 = vcmask 1043456  }
  0x11   :  { %2659 = vmatprep.subr.msk.bf16.mxu1 %vm399_vm9, %v132_v32  ;;  %v401_v33 = vsel %vm399_vm9, %v132_v32, 0  ;;  %v133_v34 = vld [vmem:[%s3375_s5 + $0x4] sm:$0xf]  ;;  %v2711_v35 = vld [vmem:[%s3375_s5 + $0x8] sm:$0x18]   ;;  %vm258_vm10 = vcmask 1041408  }
  0x12   :  { %v52_v11 = vand.u32 127, %v51_v10  ;;  %v253_v36 = vrot.slane %v2711_v35, 3  ;;  %vm2805_vm11 = vmmov 0   ;;  %v41_v38 = vld [vmem:[%s3372_s2] sm:$0x3]  ;;  %vm254_vm12 = vcmask 31744  }
  0x13   :  { %v2940_v39 = vpack.c.bf16 %v41_v38, %v41_v38  ;;  %vm302_vm13 = vcmp.eq.s32.totalorder %v2876_v1, 0  ;;  %vm303_vm14 = vcmp.eq.s32.totalorder %v2888_v4, 0  ;;  %vm304_vm15 = vcmp.eq.s32.totalorder %v2871_v0, 0  ;;  %v134_v60 = vld [vmem:[%s3375_s5 + $0x8] sm:$0x7]  ;;  %v39_v9 = vld [vmem:[%s3371_s1 + $0x10] sm:$0xff] }
  0x14   :  { %v260_v37 = vsel %vm258_vm10, %v253_v36, 0  ;;  %v2806_v40 = vmov 2   ;;  %v2294_v41 = vsel %vm302_vm13, 1.0, %v2803_v8  ;;  %v2295_v42 = vsel %vm303_vm14, 1.0, %v2803_v8 }
  0x15   :  { %2677 = vset.pattern.permute.xlu1 %v2806_v40  ;;  %v2296_v43 = vsel %vm304_vm15, 1.0, %v2803_v8  ;;  %2683 = vset.pattern.permute.xlu0 %v2806_v40  ;;  %v2951_v44 = vpack.i.bf16 %v2295_v42, %v2294_v41  ;;  %v465_v59 = vsel %vm399_vm9, %v133_v34, 0  ;;  %vm597_vm13 = vcmask 261120  }
  0x17   :  { %2679 = vperm.xlu1 %2677, %v2951_v44  }
  0x81   :  { %v61_v12 = vpop.permute.xlu1 %60  ;;  %v55_v13 = vpop.permute.xlu0 %54 }
  0x82   :  { %vm67_vm0 = vcmp.eq.s32.totalorder %v52_v11, %v61_v12  ;;  %vm65_vm1 = vcmp.eq.s32.totalorder %v52_v11, %v55_v13 }
  0x83   :  { %v2275_v16 = vsel %vm67_vm0, 1.0, %v2803_v8  ;;  %v2273_v17 = vsel %vm65_vm1, 1.0, %v2803_v8  ;;  %vm348_vm0 = vcmp.eq.s32.totalorder %v2871_v0, 1  ;;  %vm346_vm1 = vcmp.eq.s32.totalorder %v2876_v1, 1 }
  0x84   :  { %v2300_v45 = vsel %vm348_vm0, 1.0, %v2803_v8  ;;  %v2298_v46 = vsel %vm346_vm1, 1.0, %v2803_v8 }
  0x85   :  { %v64_v14 = vpop.permute.xlu1 %63  ;;  %v58_v15 = vpop.permute.xlu0 %57  ;;  %v2689_v48 = vpack.i.bf16 %v2300_v45, %v2296_v43 }
  0x86   :  { %vm68_vm2 = vcmp.eq.s32.totalorder %v52_v11, %v64_v14  ;;  %vm66_vm3 = vcmp.eq.s32.totalorder %v52_v11, %v58_v15 }
  0x87   :  { %v2276_v18 = vsel %vm68_vm2, 1.0, %v2803_v8  ;;  %v2274_v19 = vsel %vm66_vm3, 1.0, %v2803_v8  ;;  %vm347_vm2 = vcmp.eq.s32.totalorder %v2888_v4, 1  ;;  %vm305_vm3 = vcmp.eq.s32.totalorder %v2881_v3, 0  ;;  %2690 = vperm.xlu1 %2677, %v2689_v48   ;;  %v38_v4 = vld [vmem:[%s3371_s1 + $0x8] sm:$0xff] }
  0x88   :  { %v78_v20 = vpack.c.bf16 %v2276_v18, %v2275_v16  ;;  %v77_v21 = vpack.c.bf16 %v2274_v19, %v2273_v17  ;;  %v2299_v47 = vsel %vm347_vm2, 1.0, %v2803_v8  ;;  %v2297_v50 = vsel %vm305_vm3, 1.0, %v2803_v8  ;;  %v2712_v17 = vld [vmem:[%s3376_s6] sm:$0xff]   ;;  %v2713_v18 = vld [vmem:[%s3376_s6 + $0x8] sm:$0xff]  }
  0x89   :  { %v2960_v49 = vpack.i.bf16 %v2299_v47, %v2298_v46 }
  0x8a   :  { %v84_v22 = vpop.permute.xlu1 %83  ;;  %2453 = vmatprep.mubr.msk.bf16.mxu0 %vm137_vm4, %v77_v21  ;;  %v81_v23 = vpop.permute.xlu0 %80 }
  0x8b   :  { %vm92_vm5 = vcmp.eq.s32.totalorder %v52_v11, %v84_v22  ;;  %vm91_vm6 = vcmp.eq.s32.totalorder %v52_v11, %v81_v23  ;;  %2454 = vmatmul.mubr.msk.bf16.vlgmr.msra.gmra.mrb[0].mxu0 %vm137_vm4, %v78_v20  ;;  %2685 = vperm.xlu0 %2683, %v2960_v49   ;;  %v2993_v20 = vshrl.u32 %v51_v10, 7 }
  0x8c   :  { %v2278_v24 = vsel %vm92_vm5, 1.0, %v2803_v8  ;;  %v2277_v25 = vsel %vm91_vm6, 1.0, %v2803_v8  ;;  %2465 = vmatprep.mubr.msk.bf16.mxu0 %vm2805_vm11, %v2803_v8  ;;  %2464 = vmatpush3.bf16.msra.mxu0 %v260_v37  ;;  %vm349_vm5 = vcmp.eq.s32.totalorder %v2881_v3, 1  ;;  %vm392_vm6 = vcmask 64512   ;;  %v37_v3 = vld [vmem:[%s3371_s1] sm:$0xff] }
  0x8d   :  { %v103_v26 = vpack.c.bf16 %v2278_v24, %v2277_v25  ;;  %v2301_v51 = vsel %vm349_vm5, 1.0, %v2803_v8  ;;  %v520_v5 = vpack.c.bf16 %v38_v4, %v37_v3  ;;  %2487 = vmatprep.subr.bf16.mxu0 %v2712_v17  ;;  %v2996_v22 = vsub.s32 0, %v2993_v20 }
  0x8e   :  { %v87_v27 = vpop.permute.xlu1 %86  ;;  %v90_v28 = vpop.permute.xlu0 %89  ;;  %v2694_v52 = vpack.i.bf16 %v2301_v51, %v2297_v50  ;;  %v380_v23 = vsub.s32 1, %v2993_v20  ;;  %v2308_v50 = vld [vmem:[%s3377_s7] ss:$0 sm:$0xff] }
  0x8f   :  { %vm93_vm7 = vcmp.eq.s32.totalorder %v52_v11, %v87_v27  ;;  %vm94_vm8 = vcmp.eq.s32.totalorder %v52_v11, %v90_v28  ;;  %2459 = vmatprep.mubr.msk.bf16.mxu1 %vm137_vm4, %v103_v26  ;;  %v40_v11 = vld [vmem:[%s3371_s1 + $0x18] sm:$0xff] }
  0x90   :  { %v2279_v29 = vsel %vm93_vm7, 1.0, %v2803_v8  ;;  %v2280_v30 = vsel %vm94_vm8, 1.0, %v2803_v8  ;;  %2695 = vperm.xlu1 %2677, %v2694_v52   ;;  %vm529_vm7 = vcmask 1042432   ;;  %vm522_vm8 = vcmask 48128  }
  0x91   :  { %v104_v31 = vpack.c.bf16 %v2280_v30, %v2279_v29  ;;  %v531_v6 = vsel %vm529_vm7, %v134_v60, 0  ;;  %v521_v12 = vpack.c.bf16 %v40_v11, %v39_v9 }
  0x93   :  { %2460 = vmatmul.mubr.msk.bf16.vlgmr.msra.gmra.mrb[0].mxu1 %vm137_vm4, %v104_v31  ;;  %2466 = vmatmul.mubr.msk.bf16.vlgmr.msra.gmra.mrb[4].mxu0 %vm254_vm12, %v2940_v39 }
  0x94   :  { %2470 = vmatpush3.bf16.msra.mxu1 %v401_v33  ;;  %2488 = vmatpush3.bf16.msra.mxu0 %v2712_v17 }
  0x95   :  { %2660 = vmatprep.subr.msk.bf16.mxu1 %vm399_vm9, %v133_v34  ;;  %2489 = vmatprep.subr.bf16.mxu0 %v2713_v18 }
  0x96   :  { %v2680_v19 = vpop.permute.xlu1 %2679 }
  0x97   :  { %v2681_v30 = vunpack.i.l.bf16 %v2680_v19  ;;  %v2682_v35 = vunpack.i.h.bf16 %v2680_v19 }
  0x98   :  { %2490 = vmatpush3.bf16.msra.mxu0 %v2713_v18 }
 0x106   :  { %v2691_v21 = vpop.permute.xlu1 %2690 }
 0x107   :  { %v2693_v24 = vunpack.i.h.bf16 %v2691_v21  ;;  %v2692_v25 = vunpack.i.l.bf16 %v2691_v21 }
 0x10a   :  { %v2686_v26 = vpop.permute.xlu0 %2685 }
 0x10b   :  { %v2687_v31 = vunpack.i.l.bf16 %v2686_v26  ;;  %v2688_v36 = vunpack.i.h.bf16 %v2686_v26 }
 0x10f   :  { %v2696_v29 = vpop.permute.xlu1 %2695 }
 0x110   :  { %v2698_v32 = vunpack.i.h.bf16 %v2696_v29  ;;  %v2697_v10 = vunpack.i.l.bf16 %v2696_v29 }
 0x15e   :  { %v2455_v53 = vpop.f32.mrb[0].mxu0 }
 0x15f   :  { %v178_v54 = vpop.f32.mrb[1].mxu0 }
 0x160   :  { %v2456_v55 = vpop.f32.mrb[2].mxu0 }
 0x161   :  { %v391_v56 = vpack.c.bf16 %v2456_v55, %v2455_v53  ;;  %v181_v57 = vpop.f32.mrb[3].mxu0 }
 0x162   :  { %v390_v58 = vpack.c.bf16 %v181_v57, %v178_v54 }
 0x164   :  { %2471 = vmatprep.mubr.msk.bf16.mxu1 %vm392_vm6, %v390_v58 }
 0x165   :  { %2472 = vmatmul.mubr.msk.bf16.vlgmr.msra.gmra.mrb[4].mxu1 %vm392_vm6, %v391_v56 }
 0x166   :  { %v2461_v61 = vpop.f32.mrb[0].mxu1  ;;  %2476 = vmatpush3.bf16.msra.mxu1 %v465_v59  ;;  %v296_v13 = vpop.f32.mrb[4].mxu0 }
 0x167   :  { %v233_v62 = vpop.f32.mrb[1].mxu1  ;;  %2661 = vmatprep.subr.msk.bf16.mxu1 %vm529_vm7, %v134_v60  ;;  %v2467_v14 = vpop.f32.mrb[5].mxu0  ;;  %v337_v27 = vrot.slane %v296_v13, %v2996_v22  ;;  %v381_v28 = vrot.slane %v296_v13, %v380_v23 }
 0x168   :  { %v2462_v63 = vpop.f32.mrb[2].mxu1  ;;  %v299_v15 = vpop.f32.mrb[6].mxu0 }
 0x169   :  { %v457_v0 = vpack.c.bf16 %v2462_v63, %v2461_v61  ;;  %v236_v1 = vpop.f32.mrb[3].mxu1  ;;  %v2468_v16 = vpop.f32.mrb[7].mxu0  ;;  %v340_v33 = vmul.f32 %v2692_v25, %v337_v27  ;;  %v384_v34 = vmul.f32 %v2693_v24, %v381_v28  ;;  %v338_v37 = vmul.f32 %v2681_v30, %v337_v27 }
 0x16a   :  { %v456_v2 = vpack.c.bf16 %v236_v1, %v233_v62  ;;  %v382_v38 = vmul.f32 %v2687_v31, %v381_v28  ;;  %v341_v41 = vmul.f32 %v2697_v10, %v337_v27  ;;  %v385_v42 = vmul.f32 %v2698_v32, %v381_v28 }
 0x16b   :  { %v388_v40 = vadd.f32 %v384_v34, %v340_v33  ;;  %v339_v43 = vmul.f32 %v2682_v35, %v337_v27  ;;  %v383_v45 = vmul.f32 %v2688_v36, %v381_v28 }
 0x16c   :  { %2477 = vmatprep.mubr.msk.bf16.mxu1 %vm392_vm6, %v456_v2  ;;  %v386_v47 = vadd.f32 %v382_v38, %v338_v37  ;;  %v389_v52 = vadd.f32 %v385_v42, %v341_v41  ;;  %v595_v42 = vld [vmem:[%s3377_s7 + $0x1] sm:$0x1] }
 0x16d   :  { %v387_v55 = vadd.f32 %v383_v45, %v339_v43 }
 0x171   :  { %2478 = vmatmul.mubr.msk.bf16.vlgmr.msra.gmra.mrb[4].mxu1 %vm392_vm6, %v457_v0 }
 0x172   :  { %2482 = vmatpush3.bf16.msra.mxu1 %v531_v6  ;;  %2483 = vmatprep.mubr.msk.bf16.mxu1 %vm522_vm8, %v520_v5 }
 0x17d   :  { %2484 = vmatmul.mubr.msk.bf16.vlgmr.msra.gmra.mrb[4].mxu1 %vm522_vm8, %v521_v12 }
 0x250   :  { %v2485_v46 = vpop.f32.mrb[4].mxu1 }
 0x251   :  { %v2647_v48 = vadd.f32 %v2485_v46, %v388_v40  ;;  %v567_v51 = vpop.f32.mrb[5].mxu1 }
 0x252   :  { %v2648_v53 = vadd.f32 %v567_v51, %v386_v47  ;;  %v2486_v54 = vpop.f32.mrb[6].mxu1  ;;  %v2309_v47 = vld [vmem:[%s3377_s7 + $0x2] ss:$0 sm:$0xff] }
 0x253   :  { %v2649_v56 = vadd.f32 %v2486_v54, %v389_v52  ;;  %v570_v57 = vpop.f32.mrb[7].mxu1  ;;  %v593_v60 = vadd.f32 %v2647_v48, %v2308_v50 }
 0x254   :  { %v591_v58 = vadd.f32 %v2648_v53, %v2308_v50  ;;  %v2650_v59 = vadd.f32 %v570_v57, %v387_v55 }
 0x255   :  { %v594_v63 = vadd.f32 %v2649_v56, %v2308_v50  ;;  %v601_v2 = vsel %vm597_vm13, %v593_v60, 0.0 }
 0x256   :  { %v592_v61 = vadd.f32 %v2650_v59, %v2308_v50  ;;  %v598_v62 = vsel %vm597_vm13, %v591_v58, 0.0 }
 0x257   :  { %v603_v4 = vsel %vm597_vm13, %v594_v63, 0.0 }
 0x258   :  { %v599_v0 = vsel %vm597_vm13, %v592_v61, 0.0 }
 0x259   :  { %v600_v1 = vadd.f32 %v599_v0, %v598_v62  ;;  %v2715_v0 = vld [vmem:[%s3376_s6 + $0x18] sm:$0xff]  }
 0x25b   :  { %v602_v3 = vadd.f32 %v601_v2, %v600_v1  ;;  %v2310_v1 = vld [vmem:[%s3377_s7 + $0x3] ss:$0 sm:$0xff] }
 0x25d   :  { %v604_v5 = vadd.f32 %v603_v4, %v602_v3 }
 0x25f   :  { %v605_v6 = vrot.slane %v604_v5, 4 }
 0x261   :  { %v606_v9 = vadd.f32 %v605_v6, %v604_v5 }
 0x263   :  { %v607_v11 = vrot.slane %v606_v9, 2 }
 0x265   :  { %v608_v12 = vadd.f32 %v607_v11, %v606_v9 }
 0x267   :  { %v609_v13 = vrot.slane %v608_v12, 1 }
 0x269   :  { %v610_v14 = vadd.f32 %v609_v13, %v608_v12 }
 0x26b   :  { %v611_v15 = vmul.f32 0.03125, %v610_v14 }
 0x26d   :  { %v612_v16 = vsub.f32 %v591_v58, %v611_v15  ;;  %v613_v17 = vsub.f32 %v592_v61, %v611_v15  ;;  %v614_v18 = vsub.f32 %v593_v60, %v611_v15  ;;  %v615_v19 = vsub.f32 %v594_v63, %v611_v15  ;;  %v2714_v63 = vld [vmem:[%s3376_s6 + $0x10] sm:$0xff]  }
 0x26e   :  { %2495 = vmatprep.subr.bf16.mxu0 %v2714_v63 }
 0x26f   :  { %v616_v21 = vmul.f32 %v612_v16, %v612_v16  ;;  %v617_v24 = vmul.f32 %v613_v17, %v613_v17  ;;  %v618_v25 = vmul.f32 %v614_v18, %v614_v18  ;;  %v619_v26 = vmul.f32 %v615_v19, %v615_v19 }
 0x271   :  { %v620_v27 = vsel %vm597_vm13, %v616_v21, 0.0  ;;  %v621_v28 = vsel %vm597_vm13, %v617_v24, 0.0  ;;  %v623_v30 = vsel %vm597_vm13, %v618_v25, 0.0  ;;  %v625_v32 = vsel %vm597_vm13, %v619_v26, 0.0 }
 0x272   :  { %v622_v29 = vadd.f32 %v621_v28, %v620_v27 }
 0x274   :  { %v624_v31 = vadd.f32 %v623_v30, %v622_v29 }
 0x276   :  { %v626_v10 = vadd.f32 %v625_v32, %v624_v31 }
 0x278   :  { %v627_v33 = vrot.slane %v626_v10, 4 }
 0x27a   :  { %v628_v34 = vadd.f32 %v627_v33, %v626_v10 }
 0x27c   :  { %v629_v35 = vrot.slane %v628_v34, 2 }
 0x27e   :  { %v630_v36 = vadd.f32 %v629_v35, %v628_v34 }
 0x280   :  { %v631_v37 = vrot.slane %v630_v36, 1 }
 0x282   :  { %v632_v38 = vadd.f32 %v631_v37, %v630_v36 }
 0x284   :  { %v633_v40 = vmul.f32 0.03125, %v632_v38 }
 0x286   :  { %v634_v41 = vadd.f32 1e-05, %v633_v40 }
 0x288   :  { %2736 = vrsqrt.f32 %v634_v41 }
 0x292   :  { %v2737_v43 = vpop.eup %2736 }
 0x293   :  { %v636_v45 = vmul.f32 %v2737_v43, %v595_v42 }
 0x295   :  { %v640_v46 = vrot.slane %v636_v45, %v2996_v22 }
 0x297   :  { %v642_v48 = vmul.f32 %v640_v46, %v613_v17  ;;  %v641_v50 = vmul.f32 %v640_v46, %v612_v16  ;;  %v643_v51 = vmul.f32 %v640_v46, %v614_v18  ;;  %v644_v52 = vmul.f32 %v640_v46, %v615_v19 }
 0x299   :  { %v650_v53 = vadd.f32 %v2309_v47, %v642_v48  ;;  %v649_v54 = vadd.f32 %v2309_v47, %v641_v50  ;;  %v651_v55 = vadd.f32 %v2309_v47, %v643_v51  ;;  %v652_v56 = vadd.f32 %v2309_v47, %v644_v52 }
 0x29b   :  { %v654_v57 = vmax.f32 %v650_v53, 0.0  ;;  %v653_v58 = vmax.f32 %v649_v54, 0.0  ;;  %v655_v59 = vmax.f32 %v651_v55, 0.0  ;;  %v656_v60 = vmax.f32 %v652_v56, 0.0  ;;  %v735_v55 = vld [vmem:[%s3377_s7 + $0x4] sm:$0x1] }
 0x29d   :  { %v661_v61 = vpack.c.bf16 %v654_v57, %v653_v58  ;;  %v662_v62 = vpack.c.bf16 %v656_v60, %v655_v59  ;;  %v2315_v59 = vld [vmem:[%s3377_s7 + $0x5] ss:$0 sm:$0xff] }
 0x29f   :  { %2491 = vmatprep.mubr.msk.bf16.mxu0 %vm597_vm13, %v661_v61 }
 0x2a0   :  { %2492 = vmatmul.mubr.msk.bf16.vlgmr.msra.gmra.mrb[8].mxu0 %vm597_vm13, %v662_v62 }
 0x2a1   :  { %2496 = vmatpush3.bf16.msra.mxu0 %v2714_v63 }
 0x2a2   :  { %2497 = vmatprep.subr.bf16.mxu0 %v2715_v0 }
 0x2a5   :  { %2498 = vmatpush3.bf16.msra.mxu0 %v2715_v0 }
 0x373   :  { %v2493_v2 = vpop.f32.mrb[8].mxu0 }
 0x374   :  { %v720_v3 = vpop.f32.mrb[9].mxu0  ;;  %v729_v9 = vadd.f32 %v2493_v2, %v2310_v1 }
 0x375   :  { %v721_v4 = vadd.f32 %v2310_v1, %v720_v3  ;;  %v2494_v5 = vpop.f32.mrb[10].mxu0 }
 0x376   :  { %v723_v6 = vpop.f32.mrb[11].mxu0  ;;  %v732_v13 = vadd.f32 %v2494_v5, %v2310_v1  ;;  %v740_v16 = vsel %vm597_vm13, %v729_v9, 0.0 }
 0x377   :  { %v724_v11 = vadd.f32 %v2310_v1, %v723_v6  ;;  %v737_v12 = vsel %vm597_vm13, %v721_v4, 0.0 }
 0x378   :  { %v742_v18 = vsel %vm597_vm13, %v732_v13, 0.0 }
 0x379   :  { %v738_v14 = vsel %vm597_vm13, %v724_v11, 0.0 }
 0x37a   :  { %v739_v15 = vadd.f32 %v738_v14, %v737_v12  ;;  %v2717_v14 = vld [vmem:[%s3376_s6 + $0x28] sm:$0xff]  }
 0x37c   :  { %v741_v17 = vadd.f32 %v740_v16, %v739_v15  ;;  %v2316_v15 = vld [vmem:[%s3377_s7 + $0x6] ss:$0 sm:$0xff] }
 0x37e   :  { %v743_v19 = vadd.f32 %v742_v18, %v741_v17 }
 0x380   :  { %v744_v21 = vrot.slane %v743_v19, 4 }
 0x382   :  { %v745_v24 = vadd.f32 %v744_v21, %v743_v19 }
 0x384   :  { %v746_v25 = vrot.slane %v745_v24, 2 }
 0x386   :  { %v747_v26 = vadd.f32 %v746_v25, %v745_v24 }
 0x388   :  { %v748_v27 = vrot.slane %v747_v26, 1 }
 0x38a   :  { %v749_v28 = vadd.f32 %v748_v27, %v747_v26 }
 0x38c   :  { %v750_v29 = vmul.f32 0.03125, %v749_v28 }
 0x38e   :  { %v751_v30 = vsub.f32 %v721_v4, %v750_v29  ;;  %v752_v31 = vsub.f32 %v724_v11, %v750_v29  ;;  %v753_v32 = vsub.f32 %v729_v9, %v750_v29  ;;  %v754_v10 = vsub.f32 %v732_v13, %v750_v29  ;;  %v2716_v13 = vld [vmem:[%s3376_s6 + $0x20] sm:$0xff]  }
 0x38f   :  { %2503 = vmatprep.subr.bf16.mxu0 %v2716_v13 }
 0x390   :  { %v755_v33 = vmul.f32 %v751_v30, %v751_v30  ;;  %v756_v34 = vmul.f32 %v752_v31, %v752_v31  ;;  %v757_v35 = vmul.f32 %v753_v32, %v753_v32  ;;  %v758_v36 = vmul.f32 %v754_v10, %v754_v10 }
 0x392   :  { %v759_v37 = vsel %vm597_vm13, %v755_v33, 0.0  ;;  %v760_v38 = vsel %vm597_vm13, %v756_v34, 0.0  ;;  %v762_v41 = vsel %vm597_vm13, %v757_v35, 0.0  ;;  %v764_v43 = vsel %vm597_vm13, %v758_v36, 0.0 }
 0x393   :  { %v761_v40 = vadd.f32 %v760_v38, %v759_v37 }
 0x395   :  { %v763_v42 = vadd.f32 %v762_v41, %v761_v40 }
 0x397   :  { %v765_v45 = vadd.f32 %v764_v43, %v763_v42 }
 0x399   :  { %v766_v46 = vrot.slane %v765_v45, 4 }
 0x39b   :  { %v767_v47 = vadd.f32 %v766_v46, %v765_v45 }
 0x39d   :  { %v768_v48 = vrot.slane %v767_v47, 2 }
 0x39f   :  { %v769_v50 = vadd.f32 %v768_v48, %v767_v47 }
 0x3a1   :  { %v770_v51 = vrot.slane %v769_v50, 1 }
 0x3a3   :  { %v771_v52 = vadd.f32 %v770_v51, %v769_v50 }
 0x3a5   :  { %v772_v53 = vmul.f32 0.03125, %v771_v52 }
 0x3a7   :  { %v773_v54 = vadd.f32 1e-05, %v772_v53 }
 0x3a9   :  { %2738 = vrsqrt.f32 %v773_v54 }
 0x3b3   :  { %v2739_v56 = vpop.eup %2738 }
 0x3b4   :  { %v775_v57 = vmul.f32 %v2739_v56, %v735_v55 }
 0x3b6   :  { %v779_v58 = vrot.slane %v775_v57, %v2996_v22 }
 0x3b8   :  { %v781_v60 = vmul.f32 %v779_v58, %v752_v31  ;;  %v780_v61 = vmul.f32 %v779_v58, %v751_v30  ;;  %v782_v62 = vmul.f32 %v779_v58, %v753_v32  ;;  %v783_v63 = vmul.f32 %v779_v58, %v754_v10 }
 0x3ba   :  { %v789_v0 = vadd.f32 %v2315_v59, %v781_v60  ;;  %v788_v1 = vadd.f32 %v2315_v59, %v780_v61  ;;  %v790_v2 = vadd.f32 %v2315_v59, %v782_v62  ;;  %v791_v3 = vadd.f32 %v2315_v59, %v783_v63 }
 0x3bc   :  { %v793_v4 = vmax.f32 %v789_v0, 0.0  ;;  %v792_v5 = vmax.f32 %v788_v1, 0.0  ;;  %v794_v6 = vmax.f32 %v790_v2, 0.0  ;;  %v795_v9 = vmax.f32 %v791_v3, 0.0  ;;  %v874_v2 = vld [vmem:[%s3377_s7 + $0x7] sm:$0x1] }
 0x3be   :  { %v800_v11 = vpack.c.bf16 %v793_v4, %v792_v5  ;;  %v801_v12 = vpack.c.bf16 %v795_v9, %v794_v6  ;;  %v2321_v6 = vld [vmem:[%s3377_s7 + $0x8] ss:$0 sm:$0xff] }
 0x3c0   :  { %2499 = vmatprep.mubr.msk.bf16.mxu0 %vm597_vm13, %v800_v11 }
 0x3c1   :  { %2500 = vmatmul.mubr.msk.bf16.vlgmr.msra.gmra.mrb[12].mxu0 %vm597_vm13, %v801_v12 }
 0x3c2   :  { %2504 = vmatpush3.bf16.msra.mxu0 %v2716_v13 }
 0x3c3   :  { %2505 = vmatprep.subr.bf16.mxu0 %v2717_v14 }
 0x3c6   :  { %2506 = vmatpush3.bf16.msra.mxu0 %v2717_v14 }
 0x3c7   :  { %2528 = vmatprep.subr.bf16.mxu0 %v2803_v8 }
 0x494   :  { %v2501_v16 = vpop.f32.mrb[12].mxu0 }
 0x495   :  { %v859_v17 = vpop.f32.mrb[13].mxu0  ;;  %v868_v24 = vadd.f32 %v2501_v16, %v2316_v15 }
 0x496   :  { %v860_v18 = vadd.f32 %v2316_v15, %v859_v17  ;;  %v2502_v19 = vpop.f32.mrb[14].mxu0 }
 0x497   :  { %v862_v21 = vpop.f32.mrb[15].mxu0  ;;  %v871_v27 = vadd.f32 %v2502_v19, %v2316_v15  ;;  %v879_v30 = vsel %vm597_vm13, %v868_v24, 0.0 }
 0x498   :  { %v863_v25 = vadd.f32 %v2316_v15, %v862_v21  ;;  %v876_v26 = vsel %vm597_vm13, %v860_v18, 0.0 }
 0x499   :  { %v881_v32 = vsel %vm597_vm13, %v871_v27, 0.0 }
 0x49a   :  { %v877_v28 = vsel %vm597_vm13, %v863_v25, 0.0 }
 0x49b   :  { %v878_v29 = vadd.f32 %v877_v28, %v876_v26 }
 0x49d   :  { %v880_v31 = vadd.f32 %v879_v30, %v878_v29  ;;  %v1017_v29 = vld [vmem:[%s3375_s5 + $0x10] sm:$0xf] }
 0x49e   :  { %v1183_v30 = vsel %vm399_vm9, %v1017_v29, 0 }
 0x49f   :  { %v882_v10 = vadd.f32 %v881_v32, %v880_v31  ;;  %v2322_v31 = vld [vmem:[%s3377_s7 + $0x9] ss:$0 sm:$0xff] }
 0x4a1   :  { %v883_v33 = vrot.slane %v882_v10, 4 }
 0x4a3   :  { %v884_v34 = vadd.f32 %v883_v33, %v882_v10 }
 0x4a5   :  { %v885_v35 = vrot.slane %v884_v34, 2 }
 0x4a7   :  { %v886_v36 = vadd.f32 %v885_v35, %v884_v34 }
 0x4a9   :  { %v887_v37 = vrot.slane %v886_v36, 1 }
 0x4ab   :  { %v888_v38 = vadd.f32 %v887_v37, %v886_v36 }
 0x4ad   :  { %v889_v40 = vmul.f32 0.03125, %v888_v38 }
 0x4af   :  { %v890_v41 = vsub.f32 %v860_v18, %v889_v40  ;;  %v891_v42 = vsub.f32 %v863_v25, %v889_v40  ;;  %v892_v43 = vsub.f32 %v868_v24, %v889_v40  ;;  %v893_v45 = vsub.f32 %v871_v27, %v889_v40  ;;  %v2281_v27 = vld [vmem:[%s3374_s4] ss:$0 sm:$0xff] }
 0x4b0   :  { %vm112_vm14 = vcmp.eq.s32.totalorder %v2993_v20, %v2281_v27 }
 0x4b1   :  { %v894_v46 = vmul.f32 %v890_v41, %v890_v41  ;;  %v895_v47 = vmul.f32 %v891_v42, %v891_v42  ;;  %v896_v48 = vmul.f32 %v892_v43, %v892_v43  ;;  %v897_v50 = vmul.f32 %v893_v45, %v893_v45 }
 0x4b2   :  { %v2282_v28 = vsel %vm112_vm14, 1.0, %v2803_v8 }
 0x4b3   :  { %v898_v51 = vsel %vm597_vm13, %v894_v46, 0.0  ;;  %v899_v52 = vsel %vm597_vm13, %v895_v47, 0.0  ;;  %v901_v54 = vsel %vm597_vm13, %v896_v48, 0.0  ;;  %v903_v56 = vsel %vm597_vm13, %v897_v50, 0.0  ;;  %2519 = vmatprep.mubr.msk.f32.mxu1 %vm597_vm13, %v2282_v28  ;;  %v2718_v46 = vld [vmem:[%s3375_s5 + $0x14] sm:$0xff]   ;;  %v2719_v47 = vld [vmem:[%s3375_s5 + $0x1c] sm:$0xff]  }
 0x4b4   :  { %v900_v53 = vadd.f32 %v899_v52, %v898_v51  ;;  %v2807_v48 = vmov 3  }
 0x4b5   :  { %2699 = vset.pattern.permute.xlu0 %v2807_v48  ;;  %2705 = vset.pattern.permute.xlu1 %v2807_v48 }
 0x4b6   :  { %v902_v55 = vadd.f32 %v901_v54, %v900_v53  ;;  %2701 = vperm.xlu0 %2699, %v2951_v44   ;;  %2707 = vperm.xlu1 %2705, %v2960_v49  }
 0x4b8   :  { %v904_v57 = vadd.f32 %v903_v56, %v902_v55 }
 0x4ba   :  { %v905_v58 = vrot.slane %v904_v57, 4 }
 0x4bc   :  { %v906_v59 = vadd.f32 %v905_v58, %v904_v57 }
 0x4be   :  { %v907_v60 = vrot.slane %v906_v59, 2 }
 0x4c0   :  { %v908_v61 = vadd.f32 %v907_v60, %v906_v59 }
 0x4c2   :  { %v909_v62 = vrot.slane %v908_v61, 1 }
 0x4c4   :  { %v910_v63 = vadd.f32 %v909_v62, %v908_v61 }
 0x4c6   :  { %v911_v0 = vmul.f32 0.03125, %v910_v63 }
 0x4c8   :  { %v912_v1 = vadd.f32 1e-05, %v911_v0 }
 0x4ca   :  { %2740 = vrsqrt.f32 %v912_v1 }
 0x4d4   :  { %v2741_v3 = vpop.eup %2740 }
 0x4d5   :  { %v914_v4 = vmul.f32 %v2741_v3, %v874_v2 }
 0x4d7   :  { %v918_v5 = vrot.slane %v914_v4, %v2996_v22 }
 0x4d9   :  { %v920_v9 = vmul.f32 %v918_v5, %v891_v42  ;;  %v919_v11 = vmul.f32 %v918_v5, %v890_v41  ;;  %v921_v12 = vmul.f32 %v918_v5, %v892_v43  ;;  %v922_v13 = vmul.f32 %v918_v5, %v893_v45  ;;  %v1022_v42 = vld [vmem:[%s3375_s5 + $0x24] sm:$0x3] }
 0x4da   :  { %v107_v41 = vadd.s32 8, %v2993_v20  ;;  %v1105_v45 = vsel %vm258_vm10, %v1022_v42, 0 }
 0x4db   :  { %v928_v14 = vadd.f32 %v2321_v6, %v920_v9  ;;  %v927_v15 = vadd.f32 %v2321_v6, %v919_v11  ;;  %v929_v16 = vadd.f32 %v2321_v6, %v921_v12  ;;  %v930_v17 = vadd.f32 %v2321_v6, %v922_v13  ;;  %v2720_v13 = vld [vmem:[%s3376_s6 + $0x30] sm:$0xff]  }
 0x4dc   :  { %vm113_vm9 = vcmp.eq.s32.totalorder %v107_v41, %v2281_v27 }
 0x4dd   :  { %v932_v18 = vmax.f32 %v928_v14, 0.0  ;;  %v931_v19 = vmax.f32 %v927_v15, 0.0  ;;  %v933_v21 = vmax.f32 %v929_v16, 0.0  ;;  %v934_v24 = vmax.f32 %v930_v17, 0.0  ;;  %v2721_v14 = vld [vmem:[%s3376_s6 + $0x38] sm:$0xff]  }
 0x4de   :  { %v2283_v43 = vsel %vm113_vm9, 1.0, %v2803_v8  ;;  %v2334_v16 = vld [vmem:[%s3377_s7 + $0x10] ss:$0 sm:$0xff] }
 0x4df   :  { %v939_v25 = vpack.c.bf16 %v932_v18, %v931_v19  ;;  %v940_v26 = vpack.c.bf16 %v934_v24, %v933_v21 }
 0x4e1   :  { %2507 = vmatprep.mubr.msk.bf16.mxu0 %vm597_vm13, %v939_v25 }
 0x4e2   :  { %2508 = vmatmul.mubr.msk.bf16.vlgmr.msra.gmra.mrb[16].mxu0 %vm597_vm13, %v940_v26 }
 0x4e3   :  { %2530 = vmatprep.mubr.msk.bf16.mxu0 %vm2805_vm11, %v2803_v8  ;;  %2529 = vmatpush3.bf16.msra.mxu0 %v1183_v30 }
 0x4e4   :  { %2542 = vmatprep.subr.bf16.mxu0 %v2803_v8 }
 0x4ea   :  { %2531 = vmatmul.mubr.msk.bf16.vlgmr.msra.gmra.mrb[20].mxu0 %vm392_vm6, %v2896_v7 }
 0x4eb   :  { %2546 = vmatprep.mubr.msk.bf16.mxu0 %vm2805_vm11, %v2803_v8  ;;  %2543 = vmatpush3.bf16.msra.mxu0 %v2720_v13 }
 0x4ec   :  { %2544 = vmatprep.subr.bf16.mxu0 %v2803_v8 }
 0x4ef   :  { %2545 = vmatpush3.bf16.msra.mxu0 %v2721_v14 }
 0x4f0   :  { %2558 = vmatprep.subr.bf16.mxu0 %v2803_v8 }
 0x535   :  { %v2702_v61 = vpop.permute.xlu0 %2701  ;;  %v2708_v63 = vpop.permute.xlu1 %2707 }
 0x536   :  { %v2704_v49 = vunpack.i.h.bf16 %v2702_v61  ;;  %v2703_v62 = vunpack.i.l.bf16 %v2702_v61  ;;  %v2710_v0 = vunpack.i.h.bf16 %v2708_v63  ;;  %v2709_v1 = vunpack.i.l.bf16 %v2708_v63 }
 0x5b5   :  { %v2509_v32 = vpop.f32.mrb[16].mxu0 }
 0x5b6   :  { %v1007_v10 = vadd.f32 %v2509_v32, %v2322_v31  ;;  %v998_v33 = vpop.f32.mrb[17].mxu0 }
 0x5b7   :  { %v999_v34 = vadd.f32 %v2322_v31, %v998_v33  ;;  %v2510_v35 = vpop.f32.mrb[18].mxu0 }
 0x5b8   :  { %1015 = vst.msk [vmem:[%s3378_s8 + $0x10] sm:$0xff] %vm597_vm13, %v1007_v10  ;;  %v1010_v36 = vadd.f32 %v2510_v35, %v2322_v31  ;;  %v1001_v37 = vpop.f32.mrb[19].mxu0 }
 0x5b9   :  { %1013 = vst.msk [vmem:[%s3378_s8] sm:$0xff] %vm597_vm13, %v999_v34  ;;  %v1002_v7 = vadd.f32 %v2322_v31, %v1001_v37 }
 0x5ba   :  { %1016 = vst.msk [vmem:[%s3378_s8 + $0x18] sm:$0xff] %vm597_vm13, %v1010_v36  ;;  %v3107_v38 = vpack.c.bf16 %v1010_v36, %v1007_v10 }
 0x5bb   :  { %1014 = vst.msk [vmem:[%s3378_s8 + $0x8] sm:$0xff] %vm597_vm13, %v1002_v7  ;;  %v3113_v40 = vpack.c.bf16 %v1002_v7, %v999_v34  ;;  %s2809_s8 = smov [#allocation2]  }
 0x5bc   :  { %s2246_s18 = sshll.u32 %s2809_s8, 4  ;;  %s2247_s18 = int_to_ptr.vmem [resolvable:$true] %s2246_s18 }
 0x5bd   :  { %2631 = vmatprep.subr.bf16.mxu1 %v3113_v40  ;;  %v1219_v50 = vpop.f32.mrb[20].mxu0  ;;  %s2754_s19 = scalar_lea.vmem %s2247_s18, 256  ;;  %p2759_p1 = scmp.lt.s32.totalorder %s2247_s18, %s2247_s18 }
 0x5be   :  { %2633 = vmatpush3.bf16.msra.mxu1 %v3113_v40  ;;  %v2532_v51 = vpop.f32.mrb[21].mxu0  ;;  %p2755_p0 = scmp.ne.s32.totalorder %s2247_s18, %s2754_s19  ;;  %p2760_p2 = scmp.lt.s32.totalorder %s2754_s19, %s2754_s19 }
 0x5bf   :  { %2635 = vmatprep.subr.bf16.mxu1 %v3107_v38  ;;  %v1222_v52 = vpop.f32.mrb[22].mxu0 }
 0x5c0   :  { %v2533_v53 = vpop.f32.mrb[23].mxu0  ;;  %p2761_p3 = por %p2760_p2, %p2759_p1 }
 0x5c2   :  { %2637 = vmatpush3.bf16.msra.mxu1 %v3107_v38  ;;  %p2762_p4 = pnand %p2761_p3, %p2755_p0 }
 0x5c3   :  { %2522 = vmatprep.subr.bf16.mxu1 %v2803_v8 }
 0x5c5   :  { %2520 = vmatmul.mubr.msk.f32.vlgmr.msra.gmra.mrb[8].mxu1 %vm597_vm13, %v2283_v43 }
 0x5c6   :  { %2523 = vmatpush3.bf16.msra.mxu1 %v1105_v45  ;;  %2524 = vmatprep.mubr.msk.bf16.mxu1 %vm2805_vm11, %v2803_v8 }
 0x5c7   :  { %2534 = vmatprep.subr.bf16.mxu1 %v2803_v8 }
 0x5c9   :  { %2525 = vmatmul.mubr.msk.bf16.vlgmr.msra.gmra.mrb[12].mxu1 %vm254_vm12, %v2940_v39 }
 0x5ca   :  { %2535 = vmatpush3.bf16.msra.mxu1 %v2718_v46  ;;  %2538 = vmatprep.mubr.msk.bf16.mxu1 %vm2805_vm11, %v2803_v8 }
 0x5cb   :  { %2536 = vmatprep.subr.bf16.mxu1 %v2803_v8 }
 0x5ce   :  { %2537 = vmatpush3.bf16.msra.mxu1 %v2719_v47 }
 0x5cf   :  { %2550 = vmatprep.subr.bf16.mxu1 %v2803_v8 }
 0x698   :  { %v2521_v54 = vpop.f32.mrb[8].mxu1 }
 0x699   :  { %v1095_v55 = vpop.f32.mrb[9].mxu1 }
 0x69a   :  { %v1228_v56 = vpack.c.bf16 %v2521_v54, %v1095_v55  ;;  %v1294_v55 = vld [vmem:[%s3377_s7 + $0x11] sm:$0x1] }
 0x69c   :  { %2539 = vmatmul.mubr.msk.bf16.vlgmr.msra.gmra.mrb[16].mxu1 %vm597_vm13, %v1228_v56  ;;  %v1141_v57 = vpop.f32.mrb[12].mxu1 }
 0x69d   :  { %v1158_v58 = vrot.slane %v1141_v57, %v2996_v22  ;;  %v1174_v59 = vrot.slane %v1141_v57, %v380_v23  ;;  %v2526_v60 = vpop.f32.mrb[13].mxu1  ;;  %2554 = vmatprep.mubr.msk.bf16.mxu1 %vm2805_vm11, %v2803_v8 }
 0x69e   :  { %v1144_v44 = vpop.f32.mrb[14].mxu1 }
 0x69f   :  { %v2527_v2 = vpop.f32.mrb[15].mxu1  ;;  %v1159_v3 = vmul.f32 %v2703_v62, %v1158_v58  ;;  %v1160_v4 = vmul.f32 %v2704_v49, %v1158_v58  ;;  %v1175_v5 = vmul.f32 %v2709_v1, %v1174_v59  ;;  %v1176_v6 = vmul.f32 %v2710_v0, %v1174_v59  ;;  %v2335_v59 = vld [vmem:[%s3377_s7 + $0x12] ss:$0 sm:$0xff]  ;;  %v2722_v1 = vld [vmem:[%s3376_s6 + $0x40] sm:$0xff]  }
 0x6a0   :  { %2551 = vmatpush3.bf16.msra.mxu1 %v2722_v1  ;;  %v2723_v2 = vld [vmem:[%s3376_s6 + $0x48] sm:$0xff]  }
 0x6a1   :  { %v1177_v9 = vadd.f32 %v1175_v5, %v1159_v3  ;;  %v1178_v11 = vadd.f32 %v1176_v6, %v1160_v4  ;;  %2552 = vmatprep.subr.bf16.mxu1 %v2803_v8  ;;  %v2336_v3 = vld [vmem:[%s3377_s7 + $0x13] ss:$0 sm:$0xff] }
 0x6a3   :  { %v1226_v12 = vadd.f32 %v1219_v50, %v1177_v9  ;;  %v1227_v23 = vadd.f32 %v1222_v52, %v1178_v11 }
 0x6a4   :  { %2553 = vmatpush3.bf16.msra.mxu1 %v2723_v2 }
 0x76f   :  { %v1278_v15 = vpop.f32.mrb[16].mxu1 }
 0x770   :  { %v1285_v17 = vadd.f32 %v1278_v15, %v1226_v12  ;;  %v2540_v18 = vpop.f32.mrb[17].mxu1 }
 0x771   :  { %v1281_v19 = vpop.f32.mrb[18].mxu1 }
 0x772   :  { %v1292_v21 = vadd.f32 %v2334_v16, %v1285_v17  ;;  %v1286_v24 = vadd.f32 %v1281_v19, %v1227_v23  ;;  %v2541_v25 = vpop.f32.mrb[19].mxu1 }
 0x774   :  { %v1293_v26 = vadd.f32 %v2334_v16, %v1286_v24  ;;  %v1296_v27 = vsel %vm597_vm13, %v1292_v21, 0.0 }
 0x776   :  { %v1297_v28 = vsel %vm597_vm13, %v1293_v26, 0.0 }
 0x777   :  { %v1298_v29 = vadd.f32 %v1297_v28, %v1296_v27 }
 0x779   :  { %v1299_v30 = vrot.slane %v1298_v29, 4 }
 0x77b   :  { %v1300_v31 = vadd.f32 %v1299_v30, %v1298_v29 }
 0x77d   :  { %v1301_v32 = vrot.slane %v1300_v31, 2 }
 0x77f   :  { %v1302_v10 = vadd.f32 %v1301_v32, %v1300_v31 }
 0x781   :  { %v1303_v33 = vrot.slane %v1302_v10, 1 }
 0x783   :  { %v1304_v34 = vadd.f32 %v1303_v33, %v1302_v10 }
 0x785   :  { %v1305_v35 = vmul.f32 0.0625, %v1304_v34 }
 0x787   :  { %v1306_v36 = vsub.f32 %v1292_v21, %v1305_v35  ;;  %v1307_v37 = vsub.f32 %v1293_v26, %v1305_v35 }
 0x789   :  { %v1308_v7 = vmul.f32 %v1306_v36, %v1306_v36  ;;  %v1309_v41 = vmul.f32 %v1307_v37, %v1307_v37 }
 0x78b   :  { %v1310_v42 = vsel %vm597_vm13, %v1308_v7, 0.0  ;;  %v1311_v43 = vsel %vm597_vm13, %v1309_v41, 0.0  ;;  %v1403_v41 = vld [vmem:[%s3377_s7 + $0x14] sm:$0x1] }
 0x78c   :  { %v1312_v45 = vadd.f32 %v1311_v43, %v1310_v42 }
 0x78e   :  { %v1313_v46 = vrot.slane %v1312_v45, 4 }
 0x790   :  { %v1314_v47 = vadd.f32 %v1313_v46, %v1312_v45  ;;  %v2340_v46 = vld [vmem:[%s3377_s7 + $0x15] ss:$0 sm:$0xff] }
 0x792   :  { %v1315_v48 = vrot.slane %v1314_v47, 2 }
 0x794   :  { %v1316_v50 = vadd.f32 %v1315_v48, %v1314_v47 }
 0x796   :  { %v1317_v51 = vrot.slane %v1316_v50, 1 }
 0x798   :  { %v1318_v52 = vadd.f32 %v1317_v51, %v1316_v50 }
 0x79a   :  { %v1319_v53 = vmul.f32 0.0625, %v1318_v52 }
 0x79c   :  { %v1320_v54 = vadd.f32 1e-05, %v1319_v53 }
 0x79e   :  { %2742 = vrsqrt.f32 %v1320_v54 }
 0x7a8   :  { %v2743_v56 = vpop.eup %2742 }
 0x7a9   :  { %v1322_v57 = vmul.f32 %v2743_v56, %v1294_v55  ;;  %v2724_v55 = vld [vmem:[%s3376_s6 + $0x50] sm:$0xff]   ;;  %v2725_v56 = vld [vmem:[%s3376_s6 + $0x58] sm:$0xff]  }
 0x7ab   :  { %v1326_v58 = vrot.slane %v1322_v57, %v2996_v22  ;;  %v2808_v57 = vmov 0.0|0.0  }
 0x7ac   :  { %2638 = vmatprep.subr.bf16.mxu1 %v2808_v57 }
 0x7ad   :  { %v1327_v60 = vmul.f32 %v1326_v58, %v1306_v36  ;;  %v1328_v61 = vmul.f32 %v1326_v58, %v1307_v37  ;;  %v2341_v58 = vld [vmem:[%s3377_s7 + $0x16] ss:$0 sm:$0xff] }
 0x7af   :  { %v1333_v44 = vadd.f32 %v2335_v59, %v1327_v60  ;;  %v1334_v49 = vadd.f32 %v2335_v59, %v1328_v61 }
 0x7b1   :  { %v1335_v62 = vmax.f32 %v1333_v44, 0.0  ;;  %v1336_v63 = vmax.f32 %v1334_v49, 0.0 }
 0x7b3   :  { %v1341_v0 = vpack.c.bf16 %v1336_v63, %v1335_v62 }
 0x7b5   :  { %2547 = vmatmul.mubr.msk.bf16.vlgmr.msra.gmra.mrb[24].mxu0 %vm597_vm13, %v1341_v0 }
 0x7b6   :  { %2562 = vmatprep.mubr.msk.bf16.mxu0 %vm2805_vm11, %v2803_v8  ;;  %2559 = vmatpush3.bf16.msra.mxu0 %v2724_v55 }
 0x7b7   :  { %2560 = vmatprep.subr.bf16.mxu0 %v2803_v8 }
 0x7ba   :  { %2561 = vmatpush3.bf16.msra.mxu0 %v2725_v56  ;;  %v2726_v56 = vld [vmem:[%s3375_s5 + $0x28] sm:$0xff]  }
 0x7bb   :  { %2641 = vmatprep.subr.bf16.mxu0 %v2808_v57 }
 0x888   :  { %v1396_v4 = vpop.f32.mrb[24].mxu0 }
 0x889   :  { %v1397_v5 = vadd.f32 %v2336_v3, %v1396_v4  ;;  %v2548_v6 = vpop.f32.mrb[25].mxu0 }
 0x88a   :  { %v1399_v9 = vpop.f32.mrb[26].mxu0 }
 0x88b   :  { %v1400_v11 = vadd.f32 %v2336_v3, %v1399_v9  ;;  %v2549_v12 = vpop.f32.mrb[27].mxu0  ;;  %v1405_v23 = vsel %vm597_vm13, %v1397_v5, 0.0 }
 0x88d   :  { %v1406_v13 = vsel %vm597_vm13, %v1400_v11, 0.0 }
 0x88e   :  { %v1407_v14 = vadd.f32 %v1406_v13, %v1405_v23 }
 0x890   :  { %v1408_v15 = vrot.slane %v1407_v14, 4 }
 0x892   :  { %v1409_v16 = vadd.f32 %v1408_v15, %v1407_v14 }
 0x894   :  { %v1410_v17 = vrot.slane %v1409_v16, 2 }
 0x896   :  { %v1411_v18 = vadd.f32 %v1410_v17, %v1409_v16 }
 0x898   :  { %v1412_v19 = vrot.slane %v1411_v18, 1 }
 0x89a   :  { %v1413_v21 = vadd.f32 %v1412_v19, %v1411_v18 }
 0x89c   :  { %v1414_v24 = vmul.f32 0.0625, %v1413_v21 }
 0x89e   :  { %v1415_v25 = vsub.f32 %v1397_v5, %v1414_v24  ;;  %v1416_v26 = vsub.f32 %v1400_v11, %v1414_v24 }
 0x8a0   :  { %v1417_v27 = vmul.f32 %v1415_v25, %v1415_v25  ;;  %v1418_v28 = vmul.f32 %v1416_v26, %v1416_v26 }
 0x8a2   :  { %v1419_v29 = vsel %vm597_vm13, %v1417_v27, 0.0  ;;  %v1420_v30 = vsel %vm597_vm13, %v1418_v28, 0.0 }
 0x8a3   :  { %v1421_v31 = vadd.f32 %v1420_v30, %v1419_v29  ;;  %v1512_v29 = vld [vmem:[%s3377_s7 + $0x17] sm:$0x1] }
 0x8a5   :  { %v1422_v32 = vrot.slane %v1421_v31, 4 }
 0x8a7   :  { %v1423_v10 = vadd.f32 %v1422_v32, %v1421_v31 }
 0x8a9   :  { %v1424_v33 = vrot.slane %v1423_v10, 2 }
 0x8ab   :  { %v1425_v34 = vadd.f32 %v1424_v33, %v1423_v10  ;;  %v2345_v10 = vld [vmem:[%s3377_s7 + $0x18] ss:$0 sm:$0xff] }
 0x8ad   :  { %v1426_v35 = vrot.slane %v1425_v34, 1 }
 0x8af   :  { %v1427_v36 = vadd.f32 %v1426_v35, %v1425_v34 }
 0x8b1   :  { %v1428_v37 = vmul.f32 0.0625, %v1427_v36 }
 0x8b3   :  { %v1429_v7 = vadd.f32 1e-05, %v1428_v37 }
 0x8b5   :  { %2744 = vrsqrt.f32 %v1429_v7 }
 0x8bf   :  { %v2745_v42 = vpop.eup %2744 }
 0x8c0   :  { %v1431_v43 = vmul.f32 %v2745_v42, %v1403_v41  ;;  %v2286_v42 = vld [vmem:[%s3374_s4 + $0x1] ss:$0 sm:$0xff] }
 0x8c1   :  { %vm129_vm15 = vcmp.eq.s32.totalorder %v2993_v20, %v2286_v42 }
 0x8c2   :  { %v1435_v45 = vrot.slane %v1431_v43, %v2996_v22  ;;  %v2287_v43 = vsel %vm129_vm15, 1.0, %v2803_v8 }
 0x8c4   :  { %v1436_v47 = vmul.f32 %v1435_v45, %v1415_v25  ;;  %v1437_v48 = vmul.f32 %v1435_v45, %v1416_v26 }
 0x8c6   :  { %v1442_v50 = vadd.f32 %v2340_v46, %v1436_v47  ;;  %v1443_v51 = vadd.f32 %v2340_v46, %v1437_v48  ;;  %v2346_v46 = vld [vmem:[%s3377_s7 + $0x19] ss:$0 sm:$0xff] }
 0x8c8   :  { %v1444_v52 = vmax.f32 %v1442_v50, 0.0  ;;  %v1445_v53 = vmax.f32 %v1443_v51, 0.0  ;;  %v2284_v51 = vld [vmem:[%s3374_s4 + $0x2] ss:$0 sm:$0xff] }
 0x8ca   :  { %v1450_v54 = vpack.c.bf16 %v1445_v53, %v1444_v52 }
 0x8cc   :  { %2555 = vmatmul.mubr.msk.bf16.vlgmr.msra.gmra.mrb[20].mxu1 %vm597_vm13, %v1450_v54 }
 0x8cd   :  { %2570 = vmatprep.mubr.msk.f32.mxu1 %vm2805_vm11, %v2803_v8 }
 0x99f   :  { %v1505_v59 = vpop.f32.mrb[20].mxu1 }
 0x9a0   :  { %v1506_v60 = vadd.f32 %v2341_v58, %v1505_v59  ;;  %v2556_v61 = vpop.f32.mrb[21].mxu1 }
 0x9a1   :  { %v1508_v44 = vpop.f32.mrb[22].mxu1 }
 0x9a2   :  { %v1509_v49 = vadd.f32 %v2341_v58, %v1508_v44  ;;  %v2557_v62 = vpop.f32.mrb[23].mxu1  ;;  %v1514_v63 = vsel %vm597_vm13, %v1506_v60, 0.0 }
 0x9a4   :  { %v1515_v0 = vsel %vm597_vm13, %v1509_v49, 0.0 }
 0x9a5   :  { %v1516_v1 = vadd.f32 %v1515_v0, %v1514_v63 }
 0x9a7   :  { %v1517_v2 = vrot.slane %v1516_v1, 4 }
 0x9a9   :  { %v1518_v3 = vadd.f32 %v1517_v2, %v1516_v1 }
 0x9ab   :  { %v1519_v4 = vrot.slane %v1518_v3, 2 }
 0x9ad   :  { %v1520_v5 = vadd.f32 %v1519_v4, %v1518_v3 }
 0x9af   :  { %v1521_v6 = vrot.slane %v1520_v5, 1 }
 0x9b1   :  { %v1522_v9 = vadd.f32 %v1521_v6, %v1520_v5  ;;  %v2730_v6 = vld [vmem:[%s3376_s6 + $0x60] sm:$0xff]  }
 0x9b3   :  { %v1523_v11 = vmul.f32 0.0625, %v1522_v9  ;;  %v2731_v9 = vld [vmem:[%s3376_s6 + $0x68] sm:$0xff]  }
 0x9b5   :  { %v1524_v12 = vsub.f32 %v1506_v60, %v1523_v11  ;;  %v1525_v23 = vsub.f32 %v1509_v49, %v1523_v11 }
 0x9b7   :  { %v1526_v13 = vmul.f32 %v1524_v12, %v1524_v12  ;;  %v1527_v14 = vmul.f32 %v1525_v23, %v1525_v23 }
 0x9b9   :  { %v1528_v15 = vsel %vm597_vm13, %v1526_v13, 0.0  ;;  %v1529_v16 = vsel %vm597_vm13, %v1527_v14, 0.0  ;;  %v2359_v13 = vld [vmem:[%s3377_s7 + $0x20] ss:$0 sm:$0xff] }
 0x9ba   :  { %v1530_v17 = vadd.f32 %v1529_v16, %v1528_v15 }
 0x9bc   :  { %v1531_v18 = vrot.slane %v1530_v17, 4 }
 0x9be   :  { %v1532_v19 = vadd.f32 %v1531_v18, %v1530_v17 }
 0x9c0   :  { %v1533_v21 = vrot.slane %v1532_v19, 2 }
 0x9c2   :  { %v1534_v24 = vadd.f32 %v1533_v21, %v1532_v19 }
 0x9c4   :  { %v1535_v25 = vrot.slane %v1534_v24, 1 }
 0x9c6   :  { %v1536_v26 = vadd.f32 %v1535_v25, %v1534_v24 }
 0x9c8   :  { %v1537_v27 = vmul.f32 0.0625, %v1536_v26 }
 0x9ca   :  { %v1538_v28 = vadd.f32 1e-05, %v1537_v27 }
 0x9cc   :  { %2746 = vrsqrt.f32 %v1538_v28 }
 0x9d6   :  { %v2747_v30 = vpop.eup %2746 }
 0x9d7   :  { %v1540_v31 = vmul.f32 %v2747_v30, %v1512_v29 }
 0x9d9   :  { %v1544_v32 = vrot.slane %v1540_v31, %v2996_v22 }
 0x9db   :  { %v1545_v33 = vmul.f32 %v1544_v32, %v1524_v12  ;;  %v1546_v34 = vmul.f32 %v1544_v32, %v1525_v23 }
 0x9dd   :  { %v1551_v35 = vadd.f32 %v2345_v10, %v1545_v33  ;;  %v1552_v36 = vadd.f32 %v2345_v10, %v1546_v34 }
 0x9df   :  { %v1553_v37 = vmax.f32 %v1551_v35, 0.0  ;;  %v1554_v7 = vmax.f32 %v1552_v36, 0.0 }
 0x9e1   :  { %v1559_v41 = vpack.c.bf16 %v1554_v7, %v1553_v37 }
 0x9e3   :  { %2563 = vmatmul.mubr.msk.bf16.vlgmr.msra.gmra.mrb[28].mxu0 %vm597_vm13, %v1559_v41  ;;  %v1940_v41 = vld [vmem:[%s3377_s7 + $0x21] sm:$0x1] }
 0x9e4   :  { %2643 = vmatpush3.bf16.msra.mxu0 %v3113_v40  ;;  %2581 = vmatprep.mubr.msk.f32.mxu0 %vm2805_vm11, %v2803_v8  ;;  %v1631_v40 = vld [vmem:[%s3375_s5 + $0x48] sm:$0x3] }
 0x9e5   :  { %2644 = vmatprep.subr.bf16.mxu0 %v2808_v57  ;;  %v1835_v45 = vsel %vm258_vm10, %v1631_v40, 0  ;;  %vm122_vm10 = vcmp.eq.s32.totalorder %v2993_v20, %v2284_v51  ;;  %v2729_v20 = vld [vmem:[%s3375_s5 + $0x40] sm:$0xff]   ;;  %v2728_v57 = vld [vmem:[%s3375_s5 + $0x30] sm:$0xff]   ;;  %v2733_v51 = vld [vmem:[%s3376_s6 + $0x78] sm:$0xff]  }
 0x9e6   :  { %v2285_v55 = vsel %vm122_vm10, 1.0, %v2803_v8 }
 0x9e8   :  { %2646 = vmatpush3.bf16.msra.mxu0 %v3107_v38  ;;  %v2727_v38 = vld [vmem:[%s3375_s5 + $0x38] sm:$0xff]  }
 0x9e9   :  { %2592 = vmatprep.subr.bf16.mxu0 %v2803_v8 }
 0x9eb   :  { %2582 = vmatmul.mubr.msk.f32.vlgmr.msra.gmra.mrb[32].mxu0 %vm597_vm13, %v2287_v43 }
 0x9ec   :  { %2594 = vmatprep.mubr.msk.bf16.mxu0 %vm2805_vm11, %v2803_v8  ;;  %2593 = vmatpush3.bf16.msra.mxu0 %v1835_v45  ;;  %v2360_v45 = vld [vmem:[%s3377_s7 + $0x22] ss:$0 sm:$0xff] }
 0x9ed   :  { %2598 = vmatprep.subr.bf16.mxu0 %v2803_v8 }
 0x9ef   :  { %2595 = vmatmul.mubr.msk.bf16.vlgmr.msra.gmra.mrb[36].mxu0 %vm254_vm12, %v2940_v39 }
 0x9f0   :  { %2599 = vmatpush3.bf16.msra.mxu0 %v2727_v38  ;;  %2602 = vmatprep.mubr.msk.bf16.mxu0 %vm2805_vm11, %v2803_v8 }
 0x9f1   :  { %2600 = vmatprep.subr.bf16.mxu0 %v2803_v8 }
 0x9f4   :  { %2601 = vmatpush3.bf16.msra.mxu0 %v2729_v20 }
 0x9f5   :  { %2614 = vmatprep.subr.bf16.mxu0 %v2803_v8 }
 0xab6   :  { %v1614_v47 = vpop.f32.mrb[28].mxu0 }
 0xab7   :  { %v1615_v48 = vadd.f32 %v2346_v46, %v1614_v47  ;;  %v2564_v50 = vpop.f32.mrb[29].mxu0 }
 0xab8   :  { %v1617_v52 = vpop.f32.mrb[30].mxu0  ;;  %v2732_v50 = vld [vmem:[%s3376_s6 + $0x70] sm:$0xff]  }
 0xab9   :  { %1621 = vst.msk [vmem:[#allocation2] sm:$0xff] %vm597_vm13, %v1615_v48  ;;  %v1618_v39 = vadd.f32 %v2346_v46, %v1617_v52  ;;  %v2565_v53 = vpop.f32.mrb[31].mxu0  ;;  %v2361_v52 = vld [vmem:[%s3377_s7 + $0x23] ss:$0 sm:$0xff] }
 0xabb   :  { %1622 = vst.msk [vmem:[#allocation2 + $0x8] sm:$0xff] %vm597_vm13, %v1618_v39  ;;  %v2639_v54 = vpack.c.bf16 %v1618_v39, %v1615_v48 }
 0xabd   :  { %2640 = vmatpush3.bf16.msra.mxu1 %v2639_v54 }
 0xabe   :  { %2584 = vmatprep.subr.bf16.mxu1 %v2803_v8  ;;  %v1774_v58 = vpop.f32.mrb[32].mxu0 }
 0xabf   :  { %v1877_v59 = vpack.c.bf16 %v1774_v58, %v1774_v58  ;;  %v2583_v60 = vpop.f32.mrb[33].mxu0 }
 0xac0   :  { %2571 = vmatmul.mubr.msk.f32.vlgmr.msra.gmra.mrb[10].mxu1 %vm137_vm4, %v2285_v55  ;;  %vm1942_vm4 = vcmask 254976  }
 0xac1   :  { %2585 = vmatpush3.bf16.msra.mxu1 %v2726_v56  ;;  %2588 = vmatprep.mubr.msk.bf16.mxu1 %vm2805_vm11, %v2803_v8 }
 0xac2   :  { %2586 = vmatprep.subr.bf16.mxu1 %v2803_v8  ;;  %2603 = vmatmul.mubr.msk.bf16.vlgmr.msra.gmra.mrb[40].mxu0 %vm597_vm13, %v1877_v59  ;;  %v1871_v61 = vpop.f32.mrb[36].mxu0 }
 0xac3   :  { %2618 = vmatprep.mubr.msk.bf16.mxu0 %vm2805_vm11, %v2803_v8  ;;  %v2596_v44 = vpop.f32.mrb[37].mxu0  ;;  %2615 = vmatpush3.bf16.msra.mxu0 %v2732_v50  ;;  %v2139_v50 = vld [vmem:[%s3377_s7 + $0x27] sm:$0x1] }
 0xac4   :  { %v1874_v49 = vpop.f32.mrb[38].mxu0  ;;  %2616 = vmatprep.subr.bf16.mxu0 %v2803_v8 }
 0xac5   :  { %2587 = vmatpush3.bf16.msra.mxu1 %v2728_v57  ;;  %v2597_v62 = vpop.f32.mrb[39].mxu0 }
 0xac6   :  { %2606 = vmatprep.subr.bf16.mxu1 %v2803_v8 }
 0xac7   :  { %2617 = vmatpush3.bf16.msra.mxu0 %v2733_v51 }
 0xb93   :  { %v1701_v63 = vpop.f32.mrb[10].mxu1 }
 0xb94   :  { %v1778_v0 = vpack.c.bf16 %v1701_v63, %v1701_v63  ;;  %v2572_v1 = vpop.f32.mrb[11].mxu1 }
 0xb95   :  { %v1927_v2 = vpop.f32.mrb[40].mxu0 }
 0xb96   :  { %2589 = vmatmul.mubr.msk.bf16.vlgmr.msra.gmra.mrb[24].mxu1 %vm597_vm13, %v1778_v0  ;;  %v2604_v3 = vpop.f32.mrb[41].mxu0 }
 0xb97   :  { %2610 = vmatprep.mubr.msk.bf16.mxu1 %vm2805_vm11, %v2803_v8  ;;  %v1930_v4 = vpop.f32.mrb[42].mxu0  ;;  %2607 = vmatpush3.bf16.msra.mxu1 %v2730_v6 }
 0xb98   :  { %v2605_v5 = vpop.f32.mrb[43].mxu0  ;;  %2608 = vmatprep.subr.bf16.mxu1 %v2803_v8 }
 0xb9b   :  { %2609 = vmatpush3.bf16.msra.mxu1 %v2731_v9 }
 0xb9c   :  { %2622 = vmatprep.subr.bf16.mxu1 %v2803_v8 }
 0xc69   :  { %v1828_v11 = vpop.f32.mrb[24].mxu1 }
 0xc6a   :  { %v1872_v12 = vadd.f32 %v1871_v61, %v1828_v11  ;;  %v2590_v23 = vpop.f32.mrb[25].mxu1 }
 0xc6b   :  { %v1831_v14 = vpop.f32.mrb[26].mxu1 }
 0xc6c   :  { %v1933_v15 = vadd.f32 %v1927_v2, %v1872_v12  ;;  %v2591_v16 = vpop.f32.mrb[27].mxu1  ;;  %v2040_v12 = vld [vmem:[%s3377_s7 + $0x24] sm:$0x1] }
 0xc6e   :  { %v1939_v17 = vadd.f32 %v2359_v13, %v1933_v15  ;;  %v2365_v15 = vld [vmem:[%s3377_s7 + $0x25] ss:$0 sm:$0xff] }
 0xc70   :  { %v1943_v18 = vsel %vm1942_vm4, %v1939_v17, 0.0 }
 0xc71   :  { %v1944_v19 = vrot.slane %v1943_v18, 4 }
 0xc73   :  { %v1945_v21 = vadd.f32 %v1944_v19, %v1943_v18 }
 0xc75   :  { %v1946_v24 = vrot.slane %v1945_v21, 2 }
 0xc77   :  { %v1947_v25 = vadd.f32 %v1946_v24, %v1945_v21  ;;  %v2734_v21 = vld [vmem:[%s3376_s6 + $0x80] sm:$0xff]   ;;  %v2735_v24 = vld [vmem:[%s3376_s6 + $0x88] sm:$0xff]  }
 0xc79   :  { %v1948_v26 = vrot.slane %v1947_v25, 1 }
 0xc7b   :  { %v1949_v27 = vadd.f32 %v1948_v26, %v1947_v25  ;;  %v2366_v25 = vld [vmem:[%s3377_s7 + $0x26] ss:$0 sm:$0xff] }
 0xc7d   :  { %v1950_v28 = vmul.f32 0.5, %v1949_v27 }
 0xc7f   :  { %v1951_v29 = vsub.f32 %v1939_v17, %v1950_v28 }
 0xc81   :  { %v1952_v30 = vmul.f32 %v1951_v29, %v1951_v29 }
 0xc83   :  { %v1953_v31 = vsel %vm1942_vm4, %v1952_v30, 0.0 }
 0xc84   :  { %v1954_v32 = vrot.slane %v1953_v31, 4 }
 0xc86   :  { %v1955_v10 = vadd.f32 %v1954_v32, %v1953_v31 }
 0xc88   :  { %v1956_v33 = vrot.slane %v1955_v10, 2 }
 0xc8a   :  { %v1957_v34 = vadd.f32 %v1956_v33, %v1955_v10 }
 0xc8c   :  { %v1958_v35 = vrot.slane %v1957_v34, 1 }
 0xc8e   :  { %v1959_v36 = vadd.f32 %v1958_v35, %v1957_v34 }
 0xc90   :  { %v1960_v37 = vmul.f32 0.5, %v1959_v36 }
 0xc92   :  { %v1961_v7 = vadd.f32 1e-05, %v1960_v37 }
 0xc94   :  { %2748 = vrsqrt.f32 %v1961_v7 }
 0xc9e   :  { %v2749_v42 = vpop.eup %2748 }
 0xc9f   :  { %v1963_v43 = vmul.f32 %v2749_v42, %v1940_v41 }
 0xca1   :  { %v1967_v40 = vrot.slane %v1963_v43, %v2996_v22 }
 0xca3   :  { %v1968_v38 = vmul.f32 %v1967_v40, %v1951_v29 }
 0xca5   :  { %v1973_v46 = vadd.f32 %v2360_v45, %v1968_v38 }
 0xca7   :  { %v1974_v47 = vmax.f32 %v1973_v46, 0.0 }
 0xca9   :  { %v1979_v48 = vpack.c.bf16 %v1974_v47, %v1974_v47 }
 0xcab   :  { %2611 = vmatmul.mubr.msk.bf16.vlgmr.msra.gmra.mrb[28].mxu1 %vm597_vm13, %v1979_v48 }
 0xcac   :  { %2626 = vmatprep.mubr.msk.bf16.mxu1 %vm2805_vm11, %v2803_v8  ;;  %2623 = vmatpush3.bf16.msra.mxu1 %v2734_v21 }
 0xcad   :  { %2624 = vmatprep.subr.bf16.mxu1 %v2803_v8 }
 0xcb0   :  { %2625 = vmatpush3.bf16.msra.mxu1 %v2735_v24 }
 0xd7e   :  { %v2034_v39 = vpop.f32.mrb[28].mxu1 }
 0xd7f   :  { %v2035_v53 = vadd.f32 %v2361_v52, %v2034_v39  ;;  %v2612_v54 = vpop.f32.mrb[29].mxu1 }
 0xd80   :  { %v2037_v55 = vpop.f32.mrb[30].mxu1 }
 0xd81   :  { %v2042_v56 = vsel %vm1942_vm4, %v2035_v53, 0.0  ;;  %v2613_v20 = vpop.f32.mrb[31].mxu1 }
 0xd82   :  { %v2043_v57 = vrot.slane %v2042_v56, 4 }
 0xd84   :  { %v2044_v58 = vadd.f32 %v2043_v57, %v2042_v56 }
 0xd86   :  { %v2045_v59 = vrot.slane %v2044_v58, 2 }
 0xd88   :  { %v2046_v60 = vadd.f32 %v2045_v59, %v2044_v58 }
 0xd8a   :  { %v2047_v61 = vrot.slane %v2046_v60, 1 }
 0xd8c   :  { %v2048_v44 = vadd.f32 %v2047_v61, %v2046_v60 }
 0xd8e   :  { %v2049_v49 = vmul.f32 0.5, %v2048_v44 }
 0xd90   :  { %v2050_v62 = vsub.f32 %v2035_v53, %v2049_v49  ;;  %v2370_v53 = vld [vmem:[%s3377_s7 + $0x28] ss:$0 sm:$0xff] }
 0xd92   :  { %v2051_v63 = vmul.f32 %v2050_v62, %v2050_v62 }
 0xd94   :  { %v2052_v0 = vsel %vm1942_vm4, %v2051_v63, 0.0 }
 0xd95   :  { %v2053_v1 = vrot.slane %v2052_v0, 4 }
 0xd97   :  { %v2054_v2 = vadd.f32 %v2053_v1, %v2052_v0 }
 0xd99   :  { %v2055_v3 = vrot.slane %v2054_v2, 2 }
 0xd9b   :  { %v2056_v4 = vadd.f32 %v2055_v3, %v2054_v2 }
 0xd9d   :  { %v2057_v5 = vrot.slane %v2056_v4, 1 }
 0xd9f   :  { %v2058_v6 = vadd.f32 %v2057_v5, %v2056_v4 }
 0xda1   :  { %v2059_v9 = vmul.f32 0.5, %v2058_v6 }
 0xda3   :  { %v2060_v11 = vadd.f32 1e-05, %v2059_v9 }
 0xda5   :  { %2750 = vrsqrt.f32 %v2060_v11 }
 0xdaf   :  { %v2751_v23 = vpop.eup %2750 }
 0xdb0   :  { %v2062_v13 = vmul.f32 %v2751_v23, %v2040_v12 }
 0xdb2   :  { %v2066_v14 = vrot.slane %v2062_v13, %v2996_v22 }
 0xdb4   :  { %v2067_v16 = vmul.f32 %v2066_v14, %v2050_v62 }
 0xdb6   :  { %v2072_v17 = vadd.f32 %v2365_v15, %v2067_v16 }
 0xdb8   :  { %v2073_v18 = vmax.f32 %v2072_v17, 0.0 }
 0xdba   :  { %v2078_v19 = vpack.c.bf16 %v2073_v18, %v2073_v18 }
 0xdbc   :  { %2619 = vmatmul.mubr.msk.bf16.vlgmr.msra.gmra.mrb[44].mxu0 %vm597_vm13, %v2078_v19 }
 0xe8f   :  { %v2133_v26 = vpop.f32.mrb[44].mxu0 }
 0xe90   :  { %v2134_v27 = vadd.f32 %v2366_v25, %v2133_v26  ;;  %v2620_v28 = vpop.f32.mrb[45].mxu0 }
 0xe91   :  { %v2136_v29 = vpop.f32.mrb[46].mxu0 }
 0xe92   :  { %v2141_v30 = vsel %vm1942_vm4, %v2134_v27, 0.0  ;;  %v2621_v31 = vpop.f32.mrb[47].mxu0 }
 0xe93   :  { %v2142_v32 = vrot.slane %v2141_v30, 4 }
 0xe95   :  { %v2143_v10 = vadd.f32 %v2142_v32, %v2141_v30 }
 0xe97   :  { %v2144_v33 = vrot.slane %v2143_v10, 2 }
 0xe99   :  { %v2145_v8 = vadd.f32 %v2144_v33, %v2143_v10 }
 0xe9b   :  { %v2146_v34 = vrot.slane %v2145_v8, 1 }
 0xe9d   :  { %v2147_v35 = vadd.f32 %v2146_v34, %v2145_v8 }
 0xe9f   :  { %v2148_v36 = vmul.f32 0.5, %v2147_v35 }
 0xea1   :  { %v2149_v37 = vsub.f32 %v2134_v27, %v2148_v36 }
 0xea3   :  { %v2150_v7 = vmul.f32 %v2149_v37, %v2149_v37 }
 0xea5   :  { %v2151_v41 = vsel %vm1942_vm4, %v2150_v7, 0.0 }
 0xea6   :  { %v2152_v42 = vrot.slane %v2151_v41, 4 }
 0xea8   :  { %v2153_v43 = vadd.f32 %v2152_v42, %v2151_v41 }
 0xeaa   :  { %v2154_v40 = vrot.slane %v2153_v43, 2 }
 0xeac   :  { %v2155_v45 = vadd.f32 %v2154_v40, %v2153_v43 }
 0xeae   :  { %v2156_v38 = vrot.slane %v2155_v45, 1 }
 0xeb0   :  { %v2157_v46 = vadd.f32 %v2156_v38, %v2155_v45 }
 0xeb2   :  { %v2158_v47 = vmul.f32 0.5, %v2157_v46 }
 0xeb4   :  { %v2159_v48 = vadd.f32 1e-05, %v2158_v47 }
 0xeb6   :  { %2752 = vrsqrt.f32 %v2159_v48 }
 0xec0   :  { %v2753_v51 = vpop.eup %2752 }
 0xec1   :  { %v2161_v52 = vmul.f32 %v2753_v51, %v2139_v50 }
 0xec3   :  { %v2165_v39 = vrot.slane %v2161_v52, %v2996_v22 }
 0xec5   :  { %v2166_v54 = vmul.f32 %v2165_v39, %v2149_v37 }
 0xec7   :  { %v2171_v55 = vadd.f32 %v2370_v53, %v2166_v54 }
 0xec9   :  { %v2172_v56 = vmax.f32 %v2171_v55, 0.0 }
 0xecb   :  { %v2177_v20 = vpack.c.bf16 %v2172_v56, %v2172_v56 }
 0xecd   :  { %2627 = vmatmul.mubr.msk.bf16.vlgmr.msra.gmra.mrb[32].mxu1 %vm597_vm13, %v2177_v20 }
 0xece   :  { %2765 = shalt.err (!%p2762_p4)
}
 0xecf   :  { %s2766_s22 = scalar_lea.hbm %s3379_s9, 256 }
 0xed0   :  { %p2767_p5 = scmp.ne.s32.totalorder %s3379_s9, %s2766_s22  ;;  %p2770_p6 = scmp.lt.u32.totalorder %s2766_s22, %s3379_s9 }
 0xed2   :  { %p2772_p7 = pnand %p2770_p6, %p2767_p5 }
 0xed4   :  { %2775 = shalt.err (!%p2772_p7)
}
 0xed5   :  { %s2810_s3 = smov 128   ;;  %s2811_s25 = smov 8   ;;  %v2371_v22 = vld [vmem:[%s3377_s7 + $0x29] ss:$0 sm:$0xff] }
 0xed6   :  { %2252 = dma.vmem_to_hbm [thread:$0]  %s2247_s18, 256, %s3379_s9, [#allocation3], %s2810_s3, %s2810_s3, %s2811_s25  }
 0xed7   :  { %s2812_s30 = smov [#allocation4]  }
 0xed8   :  { %s2259_s2 = sshll.u32 %s2812_s30, 4  ;;  %s2260_s2 = int_to_ptr.vmem [resolvable:$true] %s2259_s2 }
 0xed9   :  { %s2776_s11 = scalar_lea.vmem %s2260_s2, 32  ;;  %p2781_p9 = scmp.lt.s32.totalorder %s2260_s2, %s2260_s2 }
 0xeda   :  { %p2777_p8 = scmp.ne.s32.totalorder %s2260_s2, %s2776_s11  ;;  %p2782_p10 = scmp.lt.s32.totalorder %s2776_s11, %s2776_s11 }
 0xedc   :  { %p2783_p11 = por %p2782_p10, %p2781_p9 }
 0xede   :  { %p2784_p12 = pnand %p2783_p11, %p2777_p8 }
 0xfa0   :  { %v2232_v57 = vpop.f32.mrb[32].mxu1 }
 0xfa1   :  { %v2233_v58 = vadd.f32 %v2371_v22, %v2232_v57  ;;  %v2628_v59 = vpop.f32.mrb[33].mxu1 }
 0xfa2   :  { %v2235_v60 = vpop.f32.mrb[34].mxu1 }
 0xfa3   :  { %2238 = vst.msk [vmem:[#allocation4] sm:$0x3] %vm1942_vm4, %v2233_v58  ;;  %v2629_v61 = vpop.f32.mrb[35].mxu1 }
 0xfa4   :  { %2787 = shalt.err (!%p2784_p12)
}
 0xfa5   :  { %s2788_s7 = scalar_lea.hbm %s3380_s10, 32 }
 0xfa6   :  { %p2789_p13 = scmp.ne.s32.totalorder %s3380_s10, %s2788_s7  ;;  %p2792_p0 = scmp.lt.u32.totalorder %s2788_s7, %s3380_s10 }
 0xfa8   :  { %p2794_p1 = pnand %p2792_p0, %p2789_p13 }
 0xfaa   :  { %2797 = shalt.err (!%p2794_p1)
}
 0xfab   :  { %2262 = dma.vmem_to_hbm [thread:$0]  %s2260_s2, 32, %s3380_s10, [#allocation5]  }
 0xfac   :  { %2798 = dma.done.wait [#allocation3], 256  }
 0xfad   :  { %2799 = vsyncadd [#allocation3], 4294967040 }
 0xfae   :  { %2800 = dma.done.wait [#allocation5], 32  }
 0xfaf   :  { %2801 = vsyncadd [#allocation5], 4294967264 }
 0xfb0   :  { %2271 = vsyncpa [#allocation3], 1 }
 0xfb1   :  { %2272 = vsyncpa [#allocation5], 1 }

</bundles_post_ra>
